<compile_context>
chip_gen: v6e
topology: v6e:2x2x1
jax: 0.10.0
libtpu: 0.0.40
codegen_flags: <defaults>
</compile_context>

<pallas_src>
import functools

import numpy as np

import jax
import jax.numpy as jnp
from jax import lax
from jax.experimental import pallas as pl
from jax.experimental.pallas import tpu as pltpu

NEG_SLOPE = 0.01   # nn.LeakyReLU() default
EPS = 1e-5         # nn.GroupNorm default
LANES = 128        # TPU lane width; channel axes are zero-padded to this
KSIZE = 3
PAD = 1


# ------------------------------ fused kernel --------------------------------

def _conv_block_kernel(x_ref, w1_ref, w2_ref, s_ref, aff_ref, p_ref, o_ref):
    # x_ref:  (1, M, KP)   im2col'd input tile (taps folded into K, zero-padded)
    # w1_ref: (KP, CP)     folded conv1 weights
    # w2_ref: (9, CP, CP)  conv2 weights per tap
    # s_ref:  (9, M, M)    spatial shift matrices (zero rows at boundary)
    # aff_ref:(6, CP)      b1, g1, be1, b2, g2, be2 (padded channels are zero)
    # p_ref:  (CP, CP)     group-sum projection / (M * chans_per_group)
    M = x_ref.shape[1]
    CP = o_ref.shape[2]
    ones_row = jnp.ones((1, M), jnp.float32)

    def gn_lrelu(x2d, gamma, beta):
        # Per-group mean / variance via MXU dots.  Padded channels have
        # gamma = beta = 0 and zero columns in p_ref, so they stay exactly 0.
        mean_c = jnp.dot(jnp.dot(ones_row, x2d, preferred_element_type=jnp.float32),
                         p_ref[...], preferred_element_type=jnp.float32)       # (1, CP)
        xc = x2d - mean_c
        var_c = jnp.dot(jnp.dot(ones_row, xc * xc, preferred_element_type=jnp.float32),
                        p_ref[...], preferred_element_type=jnp.float32)        # (1, CP)
        var_c = jnp.maximum(var_c, 0.0)
        scale = gamma * lax.rsqrt(var_c + EPS)
        y = xc * scale + beta                                                  # fused scale/shift
        return jnp.where(y >= 0, y, NEG_SLOPE * y)                             # LeakyReLU

    # ---- conv1 (stride folded into the wrapper-side im2col): ONE matmul ----
    a1 = jnp.dot(x_ref[0], w1_ref[...],
                 preferred_element_type=jnp.float32) + aff_ref[0:1, :]         # + bias1
    h = gn_lrelu(a1, aff_ref[1:2, :], aff_ref[2:3, :])                         # GN1 + LeakyReLU

    # ---- conv2 (3x3, stride 1): 9 taps as shift-matrix matmuls on the MXU --
    acc2 = jnp.zeros((M, CP), jnp.float32)
    for t in range(KSIZE * KSIZE):
        hw = jnp.dot(h, w2_ref[t], preferred_element_type=jnp.float32)         # (M, CP)
        acc2 = acc2 + jnp.dot(s_ref[t], hw, preferred_element_type=jnp.float32)
    a2 = acc2 + aff_ref[3:4, :]                                                # + bias2
    y = gn_lrelu(a2, aff_ref[4:5, :], aff_ref[5:6, :])                         # GN2 + LeakyReLU

    o_ref[0] = y                                                               # (M, 128) lane-dense store


# --------------------- one-time parameter / constant folding -----------------

def _shift_matrices(OH, OW):
    """S_t[p, q] = 1 if output pixel p reads intermediate pixel q under tap t."""
    M = OH * OW
    p_oy, p_ox = np.divmod(np.arange(M), OW)
    shifts = np.zeros((KSIZE * KSIZE, M, M), np.float32)
    for dy in range(KSIZE):
        for dx in range(KSIZE):
            sy = p_oy + dy - PAD
            sx = p_ox + dx - PAD
            valid = (sy >= 0) & (sy < OH) & (sx >= 0) & (sx < OW)
            q = np.clip(sy, 0, OH - 1) * OW + np.clip(sx, 0, OW - 1)
            S = np.zeros((M, M), np.float32)
            S[np.arange(M)[valid], q[valid]] = 1.0
            shifts[dy * KSIZE + dx] = S
    return jnp.asarray(shifts)


def fold_conv_block_params(params, *, H, W, stride=2, num_groups=8):
    """Fold weights/constants once; reuse the result for every forward call."""
    Cout, Cin = params["w1"].shape[:2]
    assert Cout % num_groups == 0 and Cout <= LANES
    s = stride
    OH = (H + 2 * PAD - KSIZE) // s + 1
    OW = (W + 2 * PAD - KSIZE) // s + 1
    M = OH * OW
    K = KSIZE * KSIZE * Cin
    KP = ((K + LANES - 1) // LANES) * LANES
    CP = LANES
    cpg = Cout // num_groups

    # conv1 as an im2col weight matrix: row (ky*3+kx)*Cin + ci, col co.
    w1t = jnp.transpose(params["w1"].astype(jnp.float32), (2, 3, 1, 0))        # (3,3,Cin,Cout)
    w1f = jnp.zeros((KP, CP), jnp.float32).at[:K, :Cout].set(w1t.reshape(K, Cout))

    # conv2 weights per tap, zero-padded to (CP, CP).
    w2t = jnp.transpose(params["w2"].astype(jnp.float32), (2, 3, 1, 0))        # (3,3,Cout,Cout)
    w2f = (jnp.zeros((KSIZE * KSIZE, CP, CP), jnp.float32)
           .at[:, :Cout, :Cout].set(w2t.reshape(KSIZE * KSIZE, Cout, Cout)))

    def padc(v):
        return jnp.pad(v.astype(jnp.float32), (0, CP - Cout))
    affine = jnp.stack([padc(params["b1"]), padc(params["g1"]), padc(params["be1"]),
                        padc(params["b2"]), padc(params["g2"]), padc(params["be2"])])

    # one (128,128) projection: per-channel spatial sums -> per-channel group means.
    ch = np.arange(CP)
    real = ch < Cout
    same = (ch[:, None] // cpg == ch[None, :] // cpg) & real[:, None] & real[None, :]
    proj = jnp.asarray(same.astype(np.float32) / float(M * cpg))

    return {"w1": w1f, "w2": w2f, "shift": _shift_matrices(OH, OW),
            "affine": affine, "proj": proj}


# ------------------------------ public wrapper -------------------------------

def conv_block_forward(x_nchw, folded, *, out_chans, stride=2):
    N, Cin, H, W = x_nchw.shape
    s = stride
    OH = (H + 2 * PAD - KSIZE) // s + 1
    OW = (W + 2 * PAD - KSIZE) // s + 1
    M = OH * OW
    KP, CP = folded["w1"].shape

    # NCHW -> NHWC, zero pad, im2col (9 taps folded into the lane axis).
    x = jnp.transpose(x_nchw, (0, 2, 3, 1)).astype(jnp.float32)
    xp = jnp.pad(x, ((0, 0), (PAD, PAD), (PAD, PAD), (0, 0)))
    cols = []
    for dy in range(KSIZE):
        for dx in range(KSIZE):
            cols.append(xp[:, dy:dy + s * (OH - 1) + 1:s,
                           dx:dx + s * (OW - 1) + 1:s, :])                     # (N,OH,OW,Cin)
    xin = jnp.concatenate(cols, axis=-1).reshape(N, M, KSIZE * KSIZE * Cin)
    xin = jnp.pad(xin, ((0, 0), (0, 0), (0, KP - KSIZE * KSIZE * Cin)))        # lane-dense K

    out = pl.pallas_call(
        _conv_block_kernel,
        out_shape=jax.ShapeDtypeStruct((N, M, CP), jnp.float32),
        grid=(N,),
        in_specs=[
            pl.BlockSpec((1, M, KP), lambda n: (n, 0, 0)),
            pl.BlockSpec((KP, CP), lambda n: (0, 0)),
            pl.BlockSpec((KSIZE * KSIZE, CP, CP), lambda n: (0, 0, 0)),
            pl.BlockSpec((KSIZE * KSIZE, M, M), lambda n: (0, 0, 0)),
            pl.BlockSpec((6, CP), lambda n: (0, 0)),
            pl.BlockSpec((CP, CP), lambda n: (0, 0)),
        ],
        out_specs=pl.BlockSpec((1, M, CP), lambda n: (n, 0, 0)),
        compiler_params=pltpu.CompilerParams(
            dimension_semantics=("parallel",),
            vmem_limit_bytes=32 * 1024 * 1024),
    )(xin, folded["w1"], folded["w2"], folded["shift"], folded["affine"], folded["proj"])

    y = out[:, :, :out_chans].reshape(N, OH, OW, out_chans)
    return jnp.transpose(y, (0, 3, 1, 2))                                      # NHWC -> NCHW


# ---------------------------- plain-JAX reference ----------------------------

def conv_block_reference(x, params, *, stride=2, num_groups=8):
    def conv(x, w, b, s):
        y = lax.conv_general_dilated(
            x, w, window_strides=(s, s), padding=((1, 1), (1, 1)),
            dimension_numbers=("NCHW", "OIHW", "NCHW"))
        return y + b[None, :, None, None]

    def gn_lrelu(x, gamma, beta):
        N, C, H, W = x.shape
        xg = x.reshape(N, num_groups, C // num_groups, H, W)
        mean = xg.mean(axis=(2, 3, 4), keepdims=True)
        var = xg.var(axis=(2, 3, 4), keepdims=True)
        xn = ((xg - mean) / jnp.sqrt(var + EPS)).reshape(N, C, H, W)
        y = xn * gamma[None, :, None, None] + beta[None, :, None, None]
        return jnp.where(y >= 0, y, NEG_SLOPE * y)

    x = gn_lrelu(conv(x, params["w1"], params["b1"], stride), params["g1"], params["be1"])
    x = gn_lrelu(conv(x, params["w2"], params["b2"], 1), params["g2"], params["be2"])
    return x


if __name__ == "__main__":
    in_chans, out_chans = 4, 16      # out_chans divisible by num_groups=8
    N, H, W = 2, 16, 16
    stride = 2

    key = jax.random.PRNGKey(0)
    k1, k2, k3, k4, kx = jax.random.split(key, 5)
    params = {
        "w1": 0.1 * jax.random.normal(k1, (out_chans, in_chans, 3, 3), jnp.float32),
        "b1": 0.1 * jax.random.normal(k2, (out_chans,), jnp.float32),
        "g1": jnp.ones((out_chans,), jnp.float32),   # GroupNorm default affine
        "be1": jnp.zeros((out_chans,), jnp.float32),
        "w2": 0.1 * jax.random.normal(k3, (out_chans, out_chans, 3, 3), jnp.float32),
        "b2": 0.1 * jax.random.normal(k4, (out_chans,), jnp.float32),
        "g2": jnp.ones((out_chans,), jnp.float32),
        "be2": jnp.zeros((out_chans,), jnp.float32),
    }
    x = jax.random.normal(kx, (N, in_chans, H, W), jnp.float32)

    # One-time folding (weights/constants only); reused for every forward call.
    folded = fold_conv_block_params(params, H=H, W=W, stride=stride, num_groups=8)

    fwd = jax.jit(functools.partial(conv_block_forward, out_chans=out_chans, stride=stride))
    out = jax.block_until_ready(fwd(x, folded))

    ref = conv_block_reference(x, params, stride=stride)
    assert out.shape == (N, out_chans, H // stride, W // stride), out.shape
    assert jnp.max(jnp.abs(out - ref)) < 1e-3, float(jnp.max(jnp.abs(out - ref)))

    print("KERNEL_OK")
</pallas_src>

<mosaic_0001>
module attributes {stable_mosaic.version = 11 : i64} {
  func.func @_conv_block_kernel(%arg0: i32, %arg1: memref<1x64x128xf32, #tpu.memory_space<vmem>>, %arg2: memref<128x128xf32, #tpu.memory_space<vmem>>, %arg3: memref<9x128x128xf32, #tpu.memory_space<vmem>>, %arg4: memref<9x64x64xf32, #tpu.memory_space<vmem>>, %arg5: memref<6x128xf32, #tpu.memory_space<vmem>>, %arg6: memref<128x128xf32, #tpu.memory_space<vmem>>, %arg7: memref<1x64x128xf32, #tpu.memory_space<vmem>>) attributes {dimension_semantics = [#tpu.dimension_semantics<parallel>], iteration_bounds = array<i64: 2>, scalar_prefetch = 0 : i64, scratch_operands = 0 : i64, tpu.core_type = #tpu.core_type<tc>, window_params = [{transform_indices = @transform_0, window_bounds = array<i64: 1, 64, 128>}, {pipeline_mode = #tpu.pipeline_mode<synchronous>, transform_indices = @transform_1, window_bounds = array<i64: 128, 128>}, {pipeline_mode = #tpu.pipeline_mode<synchronous>, transform_indices = @transform_2, window_bounds = array<i64: 9, 128, 128>}, {pipeline_mode = #tpu.pipeline_mode<synchronous>, transform_indices = @transform_3, window_bounds = array<i64: 9, 64, 64>}, {pipeline_mode = #tpu.pipeline_mode<synchronous>, transform_indices = @transform_4, window_bounds = array<i64: 6, 128>}, {pipeline_mode = #tpu.pipeline_mode<synchronous>, transform_indices = @transform_5, window_bounds = array<i64: 128, 128>}, {transform_indices = @transform_6, window_bounds = array<i64: 1, 64, 128>}]} {
    %cst = arith.constant 1.000000e+00 : f32
    %0 = vector.broadcast %cst : f32 to vector<1x64xf32>
    %c0 = arith.constant 0 : index
    %c0_0 = arith.constant 0 : index
    %c0_1 = arith.constant 0 : index
    %1 = vector.load %arg1[%c0, %c0_0, %c0_1] : memref<1x64x128xf32, #tpu.memory_space<vmem>>, vector<1x64x128xf32>
    %2 = vector.shape_cast %1 : vector<1x64x128xf32> to vector<64x128xf32>
    %c0_2 = arith.constant 0 : index
    %c0_3 = arith.constant 0 : index
    %3 = vector.load %arg2[%c0_2, %c0_3] : memref<128x128xf32, #tpu.memory_space<vmem>>, vector<128x128xf32>
    %cst_4 = arith.constant dense<0.000000e+00> : vector<64x128xf32>
    %4 = tpu.matmul %2, %3, %cst_4 {dimension_numbers = #tpu.dot_dimension_numbers<[1], [0], [0], [1], [0, 0, 1, 1], [], []>} : vector<64x128xf32>, vector<128x128xf32>, vector<64x128xf32> -> vector<64x128xf32>
    %c0_5 = arith.constant 0 : index
    %c0_6 = arith.constant 0 : index
    %5 = vector.load %arg5[%c0_5, %c0_6] : memref<6x128xf32, #tpu.memory_space<vmem>>, vector<1x128xf32>
    %6 = vector.broadcast %5 : vector<1x128xf32> to vector<64x128xf32>
    %7 = arith.addf %4, %6 : vector<64x128xf32>
    %c1 = arith.constant 1 : index
    %c0_7 = arith.constant 0 : index
    %8 = vector.load %arg5[%c1, %c0_7] : memref<6x128xf32, #tpu.memory_space<vmem>>, vector<1x128xf32>
    %c2 = arith.constant 2 : index
    %c0_8 = arith.constant 0 : index
    %9 = vector.load %arg5[%c2, %c0_8] : memref<6x128xf32, #tpu.memory_space<vmem>>, vector<1x128xf32>
    %cst_9 = arith.constant dense<0.000000e+00> : vector<1x128xf32>
    %10 = tpu.matmul %0, %7, %cst_9 {dimension_numbers = #tpu.dot_dimension_numbers<[1], [0], [0], [1], [0, 0, 1, 1], [], []>} : vector<1x64xf32>, vector<64x128xf32>, vector<1x128xf32> -> vector<1x128xf32>
    %c0_10 = arith.constant 0 : index
    %c0_11 = arith.constant 0 : index
    %11 = vector.load %arg6[%c0_10, %c0_11] : memref<128x128xf32, #tpu.memory_space<vmem>>, vector<128x128xf32>
    %cst_12 = arith.constant dense<0.000000e+00> : vector<1x128xf32>
    %12 = tpu.matmul %10, %11, %cst_12 {dimension_numbers = #tpu.dot_dimension_numbers<[1], [0], [0], [1], [0, 0, 1, 1], [], []>} : vector<1x128xf32>, vector<128x128xf32>, vector<1x128xf32> -> vector<1x128xf32>
    %13 = vector.broadcast %12 : vector<1x128xf32> to vector<64x128xf32>
    %14 = arith.subf %7, %13 : vector<64x128xf32>
    %15 = arith.mulf %14, %14 : vector<64x128xf32>
    %cst_13 = arith.constant dense<0.000000e+00> : vector<1x128xf32>
    %16 = tpu.matmul %0, %15, %cst_13 {dimension_numbers = #tpu.dot_dimension_numbers<[1], [0], [0], [1], [0, 0, 1, 1], [], []>} : vector<1x64xf32>, vector<64x128xf32>, vector<1x128xf32> -> vector<1x128xf32>
    %c0_14 = arith.constant 0 : index
    %c0_15 = arith.constant 0 : index
    %17 = vector.load %arg6[%c0_14, %c0_15] : memref<128x128xf32, #tpu.memory_space<vmem>>, vector<128x128xf32>
    %cst_16 = arith.constant dense<0.000000e+00> : vector<1x128xf32>
    %18 = tpu.matmul %16, %17, %cst_16 {dimension_numbers = #tpu.dot_dimension_numbers<[1], [0], [0], [1], [0, 0, 1, 1], [], []>} : vector<1x128xf32>, vector<128x128xf32>, vector<1x128xf32> -> vector<1x128xf32>
    %cst_17 = arith.constant 0.000000e+00 : f32
    %19 = vector.broadcast %cst_17 : f32 to vector<1x128xf32>
    %20 = arith.maximumf %18, %19 : vector<1x128xf32>
    %cst_18 = arith.constant 9.99999974E-6 : f32
    %21 = vector.broadcast %cst_18 : f32 to vector<1x128xf32>
    %22 = arith.addf %20, %21 : vector<1x128xf32>
    %23 = math.rsqrt %22 : vector<1x128xf32>
    %24 = arith.mulf %8, %23 : vector<1x128xf32>
    %25 = vector.broadcast %24 : vector<1x128xf32> to vector<64x128xf32>
    %26 = arith.mulf %14, %25 : vector<64x128xf32>
    %27 = vector.broadcast %9 : vector<1x128xf32> to vector<64x128xf32>
    %28 = arith.addf %26, %27 : vector<64x128xf32>
    %cst_19 = arith.constant 0.000000e+00 : f32
    %29 = vector.broadcast %cst_19 : f32 to vector<64x128xf32>
    %30 = arith.cmpf oge, %28, %29 : vector<64x128xf32>
    %cst_20 = arith.constant 0.00999999977 : f32
    %31 = vector.broadcast %cst_20 : f32 to vector<64x128xf32>
    %32 = arith.mulf %31, %28 : vector<64x128xf32>
    %33 = arith.select %30, %28, %32 : vector<64x128xi1>, vector<64x128xf32>
    %cst_21 = arith.constant 0.000000e+00 : f32
    %34 = vector.broadcast %cst_21 : f32 to vector<64x128xf32>
    %c0_22 = arith.constant 0 : index
    %c0_23 = arith.constant 0 : index
    %c0_24 = arith.constant 0 : index
    %35 = vector.load %arg3[%c0_22, %c0_23, %c0_24] : memref<9x128x128xf32, #tpu.memory_space<vmem>>, vector<1x128x128xf32>
    %36 = vector.shape_cast %35 : vector<1x128x128xf32> to vector<128x128xf32>
    %cst_25 = arith.constant dense<0.000000e+00> : vector<64x128xf32>
    %37 = tpu.matmul %33, %36, %cst_25 {dimension_numbers = #tpu.dot_dimension_numbers<[1], [0], [0], [1], [0, 0, 1, 1], [], []>} : vector<64x128xf32>, vector<128x128xf32>, vector<64x128xf32> -> vector<64x128xf32>
    %c0_26 = arith.constant 0 : index
    %c0_27 = arith.constant 0 : index
    %c0_28 = arith.constant 0 : index
    %38 = vector.load %arg4[%c0_26, %c0_27, %c0_28] : memref<9x64x64xf32, #tpu.memory_space<vmem>>, vector<1x64x64xf32>
    %39 = vector.shape_cast %38 : vector<1x64x64xf32> to vector<64x64xf32>
    %cst_29 = arith.constant dense<0.000000e+00> : vector<64x128xf32>
    %40 = tpu.matmul %39, %37, %cst_29 {dimension_numbers = #tpu.dot_dimension_numbers<[1], [0], [0], [1], [0, 0, 1, 1], [], []>} : vector<64x64xf32>, vector<64x128xf32>, vector<64x128xf32> -> vector<64x128xf32>
    %41 = arith.addf %34, %40 : vector<64x128xf32>
    %c1_30 = arith.constant 1 : index
    %c0_31 = arith.constant 0 : index
    %c0_32 = arith.constant 0 : index
    %42 = vector.load %arg3[%c1_30, %c0_31, %c0_32] : memref<9x128x128xf32, #tpu.memory_space<vmem>>, vector<1x128x128xf32>
    %43 = vector.shape_cast %42 : vector<1x128x128xf32> to vector<128x128xf32>
    %cst_33 = arith.constant dense<0.000000e+00> : vector<64x128xf32>
    %44 = tpu.matmul %33, %43, %cst_33 {dimension_numbers = #tpu.dot_dimension_numbers<[1], [0], [0], [1], [0, 0, 1, 1], [], []>} : vector<64x128xf32>, vector<128x128xf32>, vector<64x128xf32> -> vector<64x128xf32>
    %c1_34 = arith.constant 1 : index
    %c0_35 = arith.constant 0 : index
    %c0_36 = arith.constant 0 : index
    %45 = vector.load %arg4[%c1_34, %c0_35, %c0_36] : memref<9x64x64xf32, #tpu.memory_space<vmem>>, vector<1x64x64xf32>
    %46 = vector.shape_cast %45 : vector<1x64x64xf32> to vector<64x64xf32>
    %cst_37 = arith.constant dense<0.000000e+00> : vector<64x128xf32>
    %47 = tpu.matmul %46, %44, %cst_37 {dimension_numbers = #tpu.dot_dimension_numbers<[1], [0], [0], [1], [0, 0, 1, 1], [], []>} : vector<64x64xf32>, vector<64x128xf32>, vector<64x128xf32> -> vector<64x128xf32>
    %48 = arith.addf %41, %47 : vector<64x128xf32>
    %c2_38 = arith.constant 2 : index
    %c0_39 = arith.constant 0 : index
    %c0_40 = arith.constant 0 : index
    %49 = vector.load %arg3[%c2_38, %c0_39, %c0_40] : memref<9x128x128xf32, #tpu.memory_space<vmem>>, vector<1x128x128xf32>
    %50 = vector.shape_cast %49 : vector<1x128x128xf32> to vector<128x128xf32>
    %cst_41 = arith.constant dense<0.000000e+00> : vector<64x128xf32>
    %51 = tpu.matmul %33, %50, %cst_41 {dimension_numbers = #tpu.dot_dimension_numbers<[1], [0], [0], [1], [0, 0, 1, 1], [], []>} : vector<64x128xf32>, vector<128x128xf32>, vector<64x128xf32> -> vector<64x128xf32>
    %c2_42 = arith.constant 2 : index
    %c0_43 = arith.constant 0 : index
    %c0_44 = arith.constant 0 : index
    %52 = vector.load %arg4[%c2_42, %c0_43, %c0_44] : memref<9x64x64xf32, #tpu.memory_space<vmem>>, vector<1x64x64xf32>
    %53 = vector.shape_cast %52 : vector<1x64x64xf32> to vector<64x64xf32>
    %cst_45 = arith.constant dense<0.000000e+00> : vector<64x128xf32>
    %54 = tpu.matmul %53, %51, %cst_45 {dimension_numbers = #tpu.dot_dimension_numbers<[1], [0], [0], [1], [0, 0, 1, 1], [], []>} : vector<64x64xf32>, vector<64x128xf32>, vector<64x128xf32> -> vector<64x128xf32>
    %55 = arith.addf %48, %54 : vector<64x128xf32>
    %c3 = arith.constant 3 : index
    %c0_46 = arith.constant 0 : index
    %c0_47 = arith.constant 0 : index
    %56 = vector.load %arg3[%c3, %c0_46, %c0_47] : memref<9x128x128xf32, #tpu.memory_space<vmem>>, vector<1x128x128xf32>
    %57 = vector.shape_cast %56 : vector<1x128x128xf32> to vector<128x128xf32>
    %cst_48 = arith.constant dense<0.000000e+00> : vector<64x128xf32>
    %58 = tpu.matmul %33, %57, %cst_48 {dimension_numbers = #tpu.dot_dimension_numbers<[1], [0], [0], [1], [0, 0, 1, 1], [], []>} : vector<64x128xf32>, vector<128x128xf32>, vector<64x128xf32> -> vector<64x128xf32>
    %c3_49 = arith.constant 3 : index
    %c0_50 = arith.constant 0 : index
    %c0_51 = arith.constant 0 : index
    %59 = vector.load %arg4[%c3_49, %c0_50, %c0_51] : memref<9x64x64xf32, #tpu.memory_space<vmem>>, vector<1x64x64xf32>
    %60 = vector.shape_cast %59 : vector<1x64x64xf32> to vector<64x64xf32>
    %cst_52 = arith.constant dense<0.000000e+00> : vector<64x128xf32>
    %61 = tpu.matmul %60, %58, %cst_52 {dimension_numbers = #tpu.dot_dimension_numbers<[1], [0], [0], [1], [0, 0, 1, 1], [], []>} : vector<64x64xf32>, vector<64x128xf32>, vector<64x128xf32> -> vector<64x128xf32>
    %62 = arith.addf %55, %61 : vector<64x128xf32>
    %c4 = arith.constant 4 : index
    %c0_53 = arith.constant 0 : index
    %c0_54 = arith.constant 0 : index
    %63 = vector.load %arg3[%c4, %c0_53, %c0_54] : memref<9x128x128xf32, #tpu.memory_space<vmem>>, vector<1x128x128xf32>
    %64 = vector.shape_cast %63 : vector<1x128x128xf32> to vector<128x128xf32>
    %cst_55 = arith.constant dense<0.000000e+00> : vector<64x128xf32>
    %65 = tpu.matmul %33, %64, %cst_55 {dimension_numbers = #tpu.dot_dimension_numbers<[1], [0], [0], [1], [0, 0, 1, 1], [], []>} : vector<64x128xf32>, vector<128x128xf32>, vector<64x128xf32> -> vector<64x128xf32>
    %c4_56 = arith.constant 4 : index
    %c0_57 = arith.constant 0 : index
    %c0_58 = arith.constant 0 : index
    %66 = vector.load %arg4[%c4_56, %c0_57, %c0_58] : memref<9x64x64xf32, #tpu.memory_space<vmem>>, vector<1x64x64xf32>
    %67 = vector.shape_cast %66 : vector<1x64x64xf32> to vector<64x64xf32>
    %cst_59 = arith.constant dense<0.000000e+00> : vector<64x128xf32>
    %68 = tpu.matmul %67, %65, %cst_59 {dimension_numbers = #tpu.dot_dimension_numbers<[1], [0], [0], [1], [0, 0, 1, 1], [], []>} : vector<64x64xf32>, vector<64x128xf32>, vector<64x128xf32> -> vector<64x128xf32>
    %69 = arith.addf %62, %68 : vector<64x128xf32>
    %c5 = arith.constant 5 : index
    %c0_60 = arith.constant 0 : index
    %c0_61 = arith.constant 0 : index
    %70 = vector.load %arg3[%c5, %c0_60, %c0_61] : memref<9x128x128xf32, #tpu.memory_space<vmem>>, vector<1x128x128xf32>
    %71 = vector.shape_cast %70 : vector<1x128x128xf32> to vector<128x128xf32>
    %cst_62 = arith.constant dense<0.000000e+00> : vector<64x128xf32>
    %72 = tpu.matmul %33, %71, %cst_62 {dimension_numbers = #tpu.dot_dimension_numbers<[1], [0], [0], [1], [0, 0, 1, 1], [], []>} : vector<64x128xf32>, vector<128x128xf32>, vector<64x128xf32> -> vector<64x128xf32>
    %c5_63 = arith.constant 5 : index
    %c0_64 = arith.constant 0 : index
    %c0_65 = arith.constant 0 : index
    %73 = vector.load %arg4[%c5_63, %c0_64, %c0_65] : memref<9x64x64xf32, #tpu.memory_space<vmem>>, vector<1x64x64xf32>
    %74 = vector.shape_cast %73 : vector<1x64x64xf32> to vector<64x64xf32>
    %cst_66 = arith.constant dense<0.000000e+00> : vector<64x128xf32>
    %75 = tpu.matmul %74, %72, %cst_66 {dimension_numbers = #tpu.dot_dimension_numbers<[1], [0], [0], [1], [0, 0, 1, 1], [], []>} : vector<64x64xf32>, vector<64x128xf32>, vector<64x128xf32> -> vector<64x128xf32>
    %76 = arith.addf %69, %75 : vector<64x128xf32>
    %c6 = arith.constant 6 : index
    %c0_67 = arith.constant 0 : index
    %c0_68 = arith.constant 0 : index
    %77 = vector.load %arg3[%c6, %c0_67, %c0_68] : memref<9x128x128xf32, #tpu.memory_space<vmem>>, vector<1x128x128xf32>
    %78 = vector.shape_cast %77 : vector<1x128x128xf32> to vector<128x128xf32>
    %cst_69 = arith.constant dense<0.000000e+00> : vector<64x128xf32>
    %79 = tpu.matmul %33, %78, %cst_69 {dimension_numbers = #tpu.dot_dimension_numbers<[1], [0], [0], [1], [0, 0, 1, 1], [], []>} : vector<64x128xf32>, vector<128x128xf32>, vector<64x128xf32> -> vector<64x128xf32>
    %c6_70 = arith.constant 6 : index
    %c0_71 = arith.constant 0 : index
    %c0_72 = arith.constant 0 : index
    %80 = vector.load %arg4[%c6_70, %c0_71, %c0_72] : memref<9x64x64xf32, #tpu.memory_space<vmem>>, vector<1x64x64xf32>
    %81 = vector.shape_cast %80 : vector<1x64x64xf32> to vector<64x64xf32>
    %cst_73 = arith.constant dense<0.000000e+00> : vector<64x128xf32>
    %82 = tpu.matmul %81, %79, %cst_73 {dimension_numbers = #tpu.dot_dimension_numbers<[1], [0], [0], [1], [0, 0, 1, 1], [], []>} : vector<64x64xf32>, vector<64x128xf32>, vector<64x128xf32> -> vector<64x128xf32>
    %83 = arith.addf %76, %82 : vector<64x128xf32>
    %c7 = arith.constant 7 : index
    %c0_74 = arith.constant 0 : index
    %c0_75 = arith.constant 0 : index
    %84 = vector.load %arg3[%c7, %c0_74, %c0_75] : memref<9x128x128xf32, #tpu.memory_space<vmem>>, vector<1x128x128xf32>
    %85 = vector.shape_cast %84 : vector<1x128x128xf32> to vector<128x128xf32>
    %cst_76 = arith.constant dense<0.000000e+00> : vector<64x128xf32>
    %86 = tpu.matmul %33, %85, %cst_76 {dimension_numbers = #tpu.dot_dimension_numbers<[1], [0], [0], [1], [0, 0, 1, 1], [], []>} : vector<64x128xf32>, vector<128x128xf32>, vector<64x128xf32> -> vector<64x128xf32>
    %c7_77 = arith.constant 7 : index
    %c0_78 = arith.constant 0 : index
    %c0_79 = arith.constant 0 : index
    %87 = vector.load %arg4[%c7_77, %c0_78, %c0_79] : memref<9x64x64xf32, #tpu.memory_space<vmem>>, vector<1x64x64xf32>
    %88 = vector.shape_cast %87 : vector<1x64x64xf32> to vector<64x64xf32>
    %cst_80 = arith.constant dense<0.000000e+00> : vector<64x128xf32>
    %89 = tpu.matmul %88, %86, %cst_80 {dimension_numbers = #tpu.dot_dimension_numbers<[1], [0], [0], [1], [0, 0, 1, 1], [], []>} : vector<64x64xf32>, vector<64x128xf32>, vector<64x128xf32> -> vector<64x128xf32>
    %90 = arith.addf %83, %89 : vector<64x128xf32>
    %c8 = arith.constant 8 : index
    %c0_81 = arith.constant 0 : index
    %c0_82 = arith.constant 0 : index
    %91 = vector.load %arg3[%c8, %c0_81, %c0_82] : memref<9x128x128xf32, #tpu.memory_space<vmem>>, vector<1x128x128xf32>
    %92 = vector.shape_cast %91 : vector<1x128x128xf32> to vector<128x128xf32>
    %cst_83 = arith.constant dense<0.000000e+00> : vector<64x128xf32>
    %93 = tpu.matmul %33, %92, %cst_83 {dimension_numbers = #tpu.dot_dimension_numbers<[1], [0], [0], [1], [0, 0, 1, 1], [], []>} : vector<64x128xf32>, vector<128x128xf32>, vector<64x128xf32> -> vector<64x128xf32>
    %c8_84 = arith.constant 8 : index
    %c0_85 = arith.constant 0 : index
    %c0_86 = arith.constant 0 : index
    %94 = vector.load %arg4[%c8_84, %c0_85, %c0_86] : memref<9x64x64xf32, #tpu.memory_space<vmem>>, vector<1x64x64xf32>
    %95 = vector.shape_cast %94 : vector<1x64x64xf32> to vector<64x64xf32>
    %cst_87 = arith.constant dense<0.000000e+00> : vector<64x128xf32>
    %96 = tpu.matmul %95, %93, %cst_87 {dimension_numbers = #tpu.dot_dimension_numbers<[1], [0], [0], [1], [0, 0, 1, 1], [], []>} : vector<64x64xf32>, vector<64x128xf32>, vector<64x128xf32> -> vector<64x128xf32>
    %97 = arith.addf %90, %96 : vector<64x128xf32>
    %c3_88 = arith.constant 3 : index
    %c0_89 = arith.constant 0 : index
    %98 = vector.load %arg5[%c3_88, %c0_89] : memref<6x128xf32, #tpu.memory_space<vmem>>, vector<1x128xf32>
    %99 = vector.broadcast %98 : vector<1x128xf32> to vector<64x128xf32>
    %100 = arith.addf %97, %99 : vector<64x128xf32>
    %c4_90 = arith.constant 4 : index
    %c0_91 = arith.constant 0 : index
    %101 = vector.load %arg5[%c4_90, %c0_91] : memref<6x128xf32, #tpu.memory_space<vmem>>, vector<1x128xf32>
    %c5_92 = arith.constant 5 : index
    %c0_93 = arith.constant 0 : index
    %102 = vector.load %arg5[%c5_92, %c0_93] : memref<6x128xf32, #tpu.memory_space<vmem>>, vector<1x128xf32>
    %cst_94 = arith.constant dense<0.000000e+00> : vector<1x128xf32>
    %103 = tpu.matmul %0, %100, %cst_94 {dimension_numbers = #tpu.dot_dimension_numbers<[1], [0], [0], [1], [0, 0, 1, 1], [], []>} : vector<1x64xf32>, vector<64x128xf32>, vector<1x128xf32> -> vector<1x128xf32>
    %c0_95 = arith.constant 0 : index
    %c0_96 = arith.constant 0 : index
    %104 = vector.load %arg6[%c0_95, %c0_96] : memref<128x128xf32, #tpu.memory_space<vmem>>, vector<128x128xf32>
    %cst_97 = arith.constant dense<0.000000e+00> : vector<1x128xf32>
    %105 = tpu.matmul %103, %104, %cst_97 {dimension_numbers = #tpu.dot_dimension_numbers<[1], [0], [0], [1], [0, 0, 1, 1], [], []>} : vector<1x128xf32>, vector<128x128xf32>, vector<1x128xf32> -> vector<1x128xf32>
    %106 = vector.broadcast %105 : vector<1x128xf32> to vector<64x128xf32>
    %107 = arith.subf %100, %106 : vector<64x128xf32>
    %108 = arith.mulf %107, %107 : vector<64x128xf32>
    %cst_98 = arith.constant dense<0.000000e+00> : vector<1x128xf32>
    %109 = tpu.matmul %0, %108, %cst_98 {dimension_numbers = #tpu.dot_dimension_numbers<[1], [0], [0], [1], [0, 0, 1, 1], [], []>} : vector<1x64xf32>, vector<64x128xf32>, vector<1x128xf32> -> vector<1x128xf32>
    %c0_99 = arith.constant 0 : index
    %c0_100 = arith.constant 0 : index
    %110 = vector.load %arg6[%c0_99, %c0_100] : memref<128x128xf32, #tpu.memory_space<vmem>>, vector<128x128xf32>
    %cst_101 = arith.constant dense<0.000000e+00> : vector<1x128xf32>
    %111 = tpu.matmul %109, %110, %cst_101 {dimension_numbers = #tpu.dot_dimension_numbers<[1], [0], [0], [1], [0, 0, 1, 1], [], []>} : vector<1x128xf32>, vector<128x128xf32>, vector<1x128xf32> -> vector<1x128xf32>
    %cst_102 = arith.constant 0.000000e+00 : f32
    %112 = vector.broadcast %cst_102 : f32 to vector<1x128xf32>
    %113 = arith.maximumf %111, %112 : vector<1x128xf32>
    %cst_103 = arith.constant 9.99999974E-6 : f32
    %114 = vector.broadcast %cst_103 : f32 to vector<1x128xf32>
    %115 = arith.addf %113, %114 : vector<1x128xf32>
    %116 = math.rsqrt %115 : vector<1x128xf32>
    %117 = arith.mulf %101, %116 : vector<1x128xf32>
    %118 = vector.broadcast %117 : vector<1x128xf32> to vector<64x128xf32>
    %119 = arith.mulf %107, %118 : vector<64x128xf32>
    %120 = vector.broadcast %102 : vector<1x128xf32> to vector<64x128xf32>
    %121 = arith.addf %119, %120 : vector<64x128xf32>
    %cst_104 = arith.constant 0.000000e+00 : f32
    %122 = vector.broadcast %cst_104 : f32 to vector<64x128xf32>
    %123 = arith.cmpf oge, %121, %122 : vector<64x128xf32>
    %cst_105 = arith.constant 0.00999999977 : f32
    %124 = vector.broadcast %cst_105 : f32 to vector<64x128xf32>
    %125 = arith.mulf %124, %121 : vector<64x128xf32>
    %126 = arith.select %123, %121, %125 : vector<64x128xi1>, vector<64x128xf32>
    %c0_106 = arith.constant 0 : index
    %c0_107 = arith.constant 0 : index
    %c0_108 = arith.constant 0 : index
    %127 = vector.load %arg7[%c0_106, %c0_107, %c0_108] : memref<1x64x128xf32, #tpu.memory_space<vmem>>, vector<1x64x128xf32>
    %128 = vector.shape_cast %127 : vector<1x64x128xf32> to vector<64x128xf32>
    %129 = vector.shape_cast %126 : vector<64x128xf32> to vector<1x64x128xf32>
    tpu.vector_store %arg7[%c0_106, %c0_107, %c0_108], %129 {strides = array<i32>} : memref<1x64x128xf32, #tpu.memory_space<vmem>>, vector<1x64x128xf32>,
    return
  }
  func.func @transform_0(%arg0: i32) -> (i32, i32, i32) {
    %c0_i32 = arith.constant 0 : i32
    %c0_i32_0 = arith.constant 0 : i32
    %c0_i32_1 = arith.constant 0 : i32
    return %arg0, %c0_i32, %c0_i32_0 : i32, i32, i32
  }
  func.func @transform_1(%arg0: i32) -> (i32, i32) {
    %c0_i32 = arith.constant 0 : i32
    %c0_i32_0 = arith.constant 0 : i32
    %c0_i32_1 = arith.constant 0 : i32
    return %c0_i32, %c0_i32_0 : i32, i32
  }
  func.func @transform_2(%arg0: i32) -> (i32, i32, i32) {
    %c0_i32 = arith.constant 0 : i32
    %c0_i32_0 = arith.constant 0 : i32
    %c0_i32_1 = arith.constant 0 : i32
    %c0_i32_2 = arith.constant 0 : i32
    return %c0_i32, %c0_i32_0, %c0_i32_1 : i32, i32, i32
  }
  func.func @transform_3(%arg0: i32) -> (i32, i32, i32) {
    %c0_i32 = arith.constant 0 : i32
    %c0_i32_0 = arith.constant 0 : i32
    %c0_i32_1 = arith.constant 0 : i32
    %c0_i32_2 = arith.constant 0 : i32
    return %c0_i32, %c0_i32_0, %c0_i32_1 : i32, i32, i32
  }
  func.func @transform_4(%arg0: i32) -> (i32, i32) {
    %c0_i32 = arith.constant 0 : i32
    %c0_i32_0 = arith.constant 0 : i32
    %c0_i32_1 = arith.constant 0 : i32
    return %c0_i32, %c0_i32_0 : i32, i32
  }
  func.func @transform_5(%arg0: i32) -> (i32, i32) {
    %c0_i32 = arith.constant 0 : i32
    %c0_i32_0 = arith.constant 0 : i32
    %c0_i32_1 = arith.constant 0 : i32
    return %c0_i32, %c0_i32_0 : i32, i32
  }
  func.func @transform_6(%arg0: i32) -> (i32, i32, i32) {
    %c0_i32 = arith.constant 0 : i32
    %c0_i32_0 = arith.constant 0 : i32
    %c0_i32_1 = arith.constant 0 : i32
    return %arg0, %c0_i32, %c0_i32_0 : i32, i32, i32
  }
}

</mosaic_0001>

<bundles_post_ra>
// kernel: conv_block_forward.1
= control target key start
LH: loop header
LB: loop body
LE: loop exit
PB: predicated region body
PF: predicated region fallthrough
CT: control target
= control target key end

     0   :  { %s5342_s21 = smov 0   ;;  %s6850_s0 = inlined_call_operand.vmem [shape: f32[2,64,128], index: 0, kind: input, shape index: {}]   ;;  %s6851_s1 = inlined_call_operand.vmem [shape: f32[128,128], index: 1, kind: input, shape index: {}]   ;;  %s6852_s2 = inlined_call_operand.vmem [shape: f32[9,128,128], index: 2, kind: input, shape index: {}]   ;;  %s6853_s3 = inlined_call_operand.vmem [shape: f32[9,64,64], index: 3, kind: input, shape index: {}]   ;;  %s6854_s4 = inlined_call_operand.vmem [shape: f32[6,128], index: 4, kind: input, shape index: {}]   ;;  %s6855_s5 = inlined_call_operand.vmem [shape: f32[128,128], index: 5, kind: input, shape index: {}]   ;;  %s6856_s6 = inlined_call_operand.vmem [shape: f32[2,64,128], index: 6, kind: output, shape index: {}]  }
   0x1 LB: > { %s3584_s22 = sadd.s32 4294967295, %s5302_s21   ;;  %p3588_p0 = scmp.ge.s32.totalorder %s5302_s21, 1  ;;  %s5302_s21 = sphi %s5342_s21, %s16_s21  }
   0x2   : > { %p212_p1 = scmp.lt.s32.totalorder %s5302_s21, 3 }
   0x4   : > { %p213_p2 = pnand %p3588_p0, %p212_p1 }
   0x5   : > { %p242_p3 = scmp.lt.s32.totalorder (!%p213_p2), %s3584_s22, 1 }
   0x6   : > { %216 = sbr.rel (%p213_p2) target bundleno = 3914 (0xf4a), region = 44 }
   0xb   : > { %v275_v0 = vld [vmem:[%s6851_s1 + $0x78] sm:$0xff]  ;;  %v274_v1 = vld [vmem:[%s6851_s1 + $0x70] sm:$0xff]  ;;  %v273_v2 = vld [vmem:[%s6851_s1 + $0x68] sm:$0xff]  ;;  %s6858_s22 = smov (!%p242_p3, %s3584_s22), 1  ;;  %v5304_v24 = vmov 0.0   ;;  %vm5305_vm0 = vmmov 0   ;;  %v548_v61 = vlaneseq }
   0xc   : > { %4357 = vmatprep.subr.mxu0 %v275_v0  ;;  %v272_v3 = vld [vmem:[%s6851_s1 + $0x60] sm:$0xff]  ;;  %s3867_s7 = sshll.u32 %s6858_s22, 6  ;;  %v271_v4 = vld [vmem:[%s6851_s1 + $0x58] sm:$0xff]  ;;  %v270_v6 = vld [vmem:[%s6851_s1 + $0x50] sm:$0xff]  ;;  %4401 = vmatprep.subr.mxu1 %v5304_v24  ;;  %vm388_vm1 = vcmask 523264   ;;  %v5306_v43 = vmov 1.0  }
   0xd   : > { %4358 = vmatpush3.msra.mxu0 %v275_v0  ;;  %s5370_s10 = scalar_lea.vmem %s6850_s0, %s3867_s7  ;;  %v269_v7 = vld [vmem:[%s6851_s1 + $0x48] sm:$0xff]  ;;  %v268_v8 = vld [vmem:[%s6851_s1 + $0x40] sm:$0xff]  ;;  %v267_v9 = vld [vmem:[%s6851_s1 + $0x38] sm:$0xff]  ;;  %4417 = vmatprep.mubr.msk.f32.mxu1 %vm5305_vm0, %v5304_v24  ;;  %v549_v62 = vshrl.u32 %v548_v61, 7  ;;  %s251_s20 = scalar_lea.vmem %s6856_s6, %s3867_s7 }
   0xe   : > { %4359 = vmatprep.subr.mxu0 %v274_v1  ;;  %v252_v5 = vld [vmem:[%s5370_s10] sm:$0xff]  ;;  %v266_v10 = vld [vmem:[%s6851_s1 + $0x30] sm:$0xff]  ;;  %v265_v11 = vld [vmem:[%s6851_s1 + $0x28] sm:$0xff] }
   0xf   : > { %4360 = vmatpush3.msra.mxu0 %v274_v1  ;;  %4389 = vmatprep.mubr.f32.mxu0 %v252_v5  ;;  %v264_v12 = vld [vmem:[%s6851_s1 + $0x20] sm:$0xff]  ;;  %v263_v13 = vld [vmem:[%s6851_s1 + $0x18] sm:$0xff]  ;;  %v262_v14 = vld [vmem:[%s6851_s1 + $0x10] sm:$0xff]  ;;  %v5572_v63 = vsub.s32 0, %v549_v62 }
  0x10   : > { %4361 = vmatprep.subr.mxu0 %v273_v2  ;;  %v261_v15 = vld [vmem:[%s6851_s1 + $0x8] sm:$0xff]  ;;  %v260_v16 = vld [vmem:[%s6851_s1] sm:$0xff]  ;;  %v254_v18 = vld [vmem:[%s5370_s10 + $0x10] sm:$0xff] }
  0x11   : > { %4362 = vmatpush3.msra.mxu0 %v273_v2  ;;  %v253_v17 = vld [vmem:[%s5370_s10 + $0x8] sm:$0xff]  ;;  %v255_v19 = vld [vmem:[%s5370_s10 + $0x18] sm:$0xff]  ;;  %v256_v20 = vld [vmem:[%s5370_s10 + $0x20] sm:$0xff] }
  0x12   : > { %4363 = vmatprep.subr.mxu0 %v272_v3  ;;  %v257_v21 = vld [vmem:[%s5370_s10 + $0x28] sm:$0xff]  ;;  %v258_v22 = vld [vmem:[%s5370_s10 + $0x30] sm:$0xff]  ;;  %v259_v23 = vld [vmem:[%s5370_s10 + $0x38] sm:$0xff] }
  0x13   : > { %4364 = vmatpush3.msra.mxu0 %v272_v3  ;;  %v3593_v31 = vld [vmem:[%s6854_s4] ss:$0 sm:$0xff]  ;;  %v5458_v42 = vld [vmem:[%s6855_s5 + $0x78] sm:$0xff]  ;;  %v5467_v44 = vld [vmem:[%s6855_s5 + $0x70] sm:$0xff] }
  0x14   : > { %4365 = vmatprep.subr.mxu0 %v271_v4  ;;  %v5476_v45 = vld [vmem:[%s6855_s5 + $0x68] sm:$0xff]  ;;  %v5483_v46 = vld [vmem:[%s6855_s5 + $0x60] sm:$0xff]  ;;  %v5490_v47 = vld [vmem:[%s6855_s5 + $0x58] sm:$0xff] }
  0x15   : > { %4366 = vmatpush3.msra.mxu0 %v271_v4  ;;  %v5497_v48 = vld [vmem:[%s6855_s5 + $0x50] sm:$0xff]  ;;  %v5504_v49 = vld [vmem:[%s6855_s5 + $0x48] sm:$0xff]  ;;  %v5511_v50 = vld [vmem:[%s6855_s5 + $0x40] sm:$0xff] }
  0x16   : > { %4367 = vmatprep.subr.mxu0 %v270_v6  ;;  %v5518_v51 = vld [vmem:[%s6855_s5 + $0x38] sm:$0xff]  ;;  %v5525_v52 = vld [vmem:[%s6855_s5 + $0x30] sm:$0xff]  ;;  %v5532_v53 = vld [vmem:[%s6855_s5 + $0x28] sm:$0xff] }
  0x17   : > { %4368 = vmatpush3.msra.mxu0 %v270_v6  ;;  %v5539_v54 = vld [vmem:[%s6855_s5 + $0x20] sm:$0xff]  ;;  %v5546_v55 = vld [vmem:[%s6855_s5 + $0x18] sm:$0xff]  ;;  %v5553_v56 = vld [vmem:[%s6855_s5 + $0x10] sm:$0xff] }
  0x18   : > { %4369 = vmatprep.subr.mxu0 %v269_v7  ;;  %v5560_v57 = vld [vmem:[%s6855_s5 + $0x8] sm:$0xff]  ;;  %v5569_v58 = vld [vmem:[%s6855_s5] sm:$0xff] }
  0x19   : > { %4370 = vmatpush3.msra.mxu0 %v269_v7 }
  0x1a   : > { %4371 = vmatprep.subr.mxu0 %v268_v8 }
  0x1b   : > { %4372 = vmatpush3.msra.mxu0 %v268_v8 }
  0x1c   : > { %4373 = vmatprep.subr.mxu0 %v267_v9 }
  0x1d   : > { %4374 = vmatpush3.msra.mxu0 %v267_v9 }
  0x1e   : > { %4375 = vmatprep.subr.mxu0 %v266_v10 }
  0x1f   : > { %4376 = vmatpush3.msra.mxu0 %v266_v10 }
  0x20   : > { %4377 = vmatprep.subr.mxu0 %v265_v11 }
  0x21   : > { %4378 = vmatpush3.msra.mxu0 %v265_v11 }
  0x22   : > { %4379 = vmatprep.subr.mxu0 %v264_v12 }
  0x23   : > { %4380 = vmatpush3.msra.mxu0 %v264_v12 }
  0x24   : > { %4381 = vmatprep.subr.mxu0 %v263_v13 }
  0x25   : > { %4382 = vmatpush3.msra.mxu0 %v263_v13 }
  0x26   : > { %4383 = vmatprep.subr.mxu0 %v262_v14 }
  0x27   : > { %4384 = vmatpush3.msra.mxu0 %v262_v14 }
  0x28   : > { %4385 = vmatprep.subr.mxu0 %v261_v15 }
  0x29   : > { %4386 = vmatpush3.msra.mxu0 %v261_v15 }
  0x2a   : > { %4387 = vmatprep.subr.mxu0 %v260_v16 }
  0x2b   : > { %4388 = vmatpush3.msra.mxu0 %v260_v16 }
  0x2c   : > { %4390 = vmatmul.mubr.f32.vlgmr.msra.gmra.mxu0 %v253_v17  ;;  %4455 = vmatprep.subr.mxu0 %v5304_v24 }
  0x2d   : > { %4392 = vmatprep.mubr.f32.mxu0 %v254_v18 }
  0x30   : > { %4393 = vmatmul.mubr.f32.gmra.mxu0 %v255_v19  ;;  %v3612_v19 = vld [vmem:[%s6852_s2 + $0xf8] sm:$0xff] }
  0x31   : > { %4395 = vmatprep.mubr.f32.mxu0 %v256_v20  ;;  %v775_v20 = vld [vmem:[%s6852_s2 + $0x78] sm:$0xff] }
  0x34   : > { %4396 = vmatmul.mubr.f32.gmra.mxu0 %v257_v21 }
  0x35   : > { %4398 = vmatprep.mubr.f32.mxu0 %v258_v22 }
  0x38   : > { %4399 = vmatmul.mubr.f32.gmra.mxu0 %v259_v23  ;;  %v3611_v23 = vld [vmem:[%s6852_s2 + $0xf0] sm:$0xff] }
  0x39   : > { %4471 = vmatprep.mubr.msk.f32.mxu0 %vm5305_vm0, %v5304_v24 }
  0xec   : > { %v4391_v25 = vpop.f32.mrf.mxu0 }
  0xed   : > { %v5447_v40 = vadd.f32 %v4391_v25, %v3593_v31  ;;  %v774_v25 = vld [vmem:[%s6852_s2 + $0x70] sm:$0xff] }
  0xee   : > { %v347_v26 = vpop.f32.mrf.mxu0 }
  0xef   : > { %v5451_v41 = vadd.f32 %v3593_v31, %v347_v26  ;;  %v3610_v26 = vld [vmem:[%s6852_s2 + $0xe8] sm:$0xff] }
  0xf0   : > { %v4394_v27 = vpop.f32.mrf.mxu0 }
  0xf1   : > { %v5439_v38 = vadd.f32 %v4394_v27, %v3593_v31  ;;  %v773_v27 = vld [vmem:[%s6852_s2 + $0x68] sm:$0xff] }
  0xf2   : > { %v357_v28 = vpop.f32.mrf.mxu0 }
  0xf3   : > { %v5443_v39 = vadd.f32 %v3593_v31, %v357_v28  ;;  %v3609_v28 = vld [vmem:[%s6852_s2 + $0xe0] sm:$0xff] }
  0xf4   : > { %v4397_v29 = vpop.f32.mrf.mxu0 }
  0xf5   : > { %v5431_v36 = vadd.f32 %v4397_v29, %v3593_v31  ;;  %v772_v29 = vld [vmem:[%s6852_s2 + $0x60] sm:$0xff] }
  0xf6   : > { %v367_v30 = vpop.f32.mrf.mxu0 }
  0xf7   : > { %v5435_v37 = vadd.f32 %v3593_v31, %v367_v30  ;;  %v3608_v30 = vld [vmem:[%s6852_s2 + $0xd8] sm:$0xff] }
  0xf8   : > { %v4400_v32 = vpop.f32.mrf.mxu0 }
  0xf9   : > { %v5425_v33 = vadd.f32 %v4400_v32, %v3593_v31  ;;  %v3607_v32 = vld [vmem:[%s6852_s2 + $0xd0] sm:$0xff] }
  0xfa   : > { %v377_v34 = vpop.f32.mrf.mxu0 }
  0xfb   : > { %v5427_v35 = vadd.f32 %v3593_v31, %v377_v34  ;;  %4402 = vmatpush3.msra.mxu1 %v5425_v33  ;;  %v771_v31 = vld [vmem:[%s6852_s2 + $0x58] sm:$0xff]  ;;  %v3606_v34 = vld [vmem:[%s6852_s2 + $0xc8] sm:$0xff] }
  0xfc   : > { %4403 = vmatprep.subr.mxu1 %v5304_v24 }
  0xfd   : > { %4404 = vmatpush3.msra.mxu1 %v5427_v35 }
  0xfe   : > { %4405 = vmatprep.subr.mxu1 %v5304_v24 }
  0xff   : > { %4406 = vmatpush3.msra.mxu1 %v5431_v36 }
 0x100   : > { %4407 = vmatprep.subr.mxu1 %v5304_v24 }
 0x101   : > { %4408 = vmatpush3.msra.mxu1 %v5435_v37 }
 0x102   : > { %4409 = vmatprep.subr.mxu1 %v5304_v24 }
 0x103   : > { %4410 = vmatpush3.msra.mxu1 %v5439_v38 }
 0x104   : > { %4411 = vmatprep.subr.mxu1 %v5304_v24 }
 0x105   : > { %4412 = vmatpush3.msra.mxu1 %v5443_v39 }
 0x106   : > { %4413 = vmatprep.subr.mxu1 %v5304_v24 }
 0x107   : > { %4414 = vmatpush3.msra.mxu1 %v5447_v40 }
 0x108   : > { %4415 = vmatprep.subr.mxu1 %v5304_v24 }
 0x109   : > { %4416 = vmatpush3.msra.mxu1 %v5451_v41 }
 0x10a   : > { %4418 = vmatmul.mubr.msk.f32.vlgmr.msra.gmra.mxu1 %vm388_vm1, %v5306_v43  ;;  %4420 = vmatprep.subr.mxu1 %v5304_v24 }
 0x10b   : > { %4421 = vmatpush3.msra.mxu1 %v5458_v42  ;;  %4452 = vmatprep.mubr.msk.f32.mxu1 %vm5305_vm0, %v5304_v24 }
 0x10c   : > { %4422 = vmatprep.subr.mxu1 %v5304_v24 }
 0x10d   : > { %4423 = vmatpush3.msra.mxu1 %v5467_v44 }
 0x10e   : > { %4424 = vmatprep.subr.mxu1 %v5304_v24 }
 0x10f   : > { %4425 = vmatpush3.msra.mxu1 %v5476_v45 }
 0x110   : > { %4426 = vmatprep.subr.mxu1 %v5304_v24 }
 0x111   : > { %4427 = vmatpush3.msra.mxu1 %v5483_v46 }
 0x112   : > { %4428 = vmatprep.subr.mxu1 %v5304_v24 }
 0x113   : > { %4429 = vmatpush3.msra.mxu1 %v5490_v47 }
 0x114   : > { %4430 = vmatprep.subr.mxu1 %v5304_v24 }
 0x115   : > { %4431 = vmatpush3.msra.mxu1 %v5497_v48 }
 0x116   : > { %4432 = vmatprep.subr.mxu1 %v5304_v24 }
 0x117   : > { %4433 = vmatpush3.msra.mxu1 %v5504_v49 }
 0x118   : > { %4434 = vmatprep.subr.mxu1 %v5304_v24 }
 0x119   : > { %4435 = vmatpush3.msra.mxu1 %v5511_v50 }
 0x11a   : > { %4436 = vmatprep.subr.mxu1 %v5304_v24 }
 0x11b   : > { %4437 = vmatpush3.msra.mxu1 %v5518_v51 }
 0x11c   : > { %4438 = vmatprep.subr.mxu1 %v5304_v24 }
 0x11d   : > { %4439 = vmatpush3.msra.mxu1 %v5525_v52 }
 0x11e   : > { %4440 = vmatprep.subr.mxu1 %v5304_v24 }
 0x11f   : > { %4441 = vmatpush3.msra.mxu1 %v5532_v53 }
 0x120   : > { %4442 = vmatprep.subr.mxu1 %v5304_v24 }
 0x121   : > { %4443 = vmatpush3.msra.mxu1 %v5539_v54 }
 0x122   : > { %4444 = vmatprep.subr.mxu1 %v5304_v24 }
 0x123   : > { %4445 = vmatpush3.msra.mxu1 %v5546_v55 }
 0x124   : > { %4446 = vmatprep.subr.mxu1 %v5304_v24 }
 0x125   : > { %4447 = vmatpush3.msra.mxu1 %v5553_v56 }
 0x126   : > { %4448 = vmatprep.subr.mxu1 %v5304_v24 }
 0x127   : > { %4449 = vmatpush3.msra.mxu1 %v5560_v57 }
 0x128   : > { %4450 = vmatprep.subr.mxu1 %v5304_v24 }
 0x129   : > { %4451 = vmatpush3.msra.mxu1 %v5569_v58 }
 0x12a   : > { %4509 = vmatprep.subr.mxu1 %v775_v20 }
 0x1ca   : > { %v458_v59 = vpop.f32.mrf.mxu1 }
 0x1cb   : > { %4453 = vmatmul.mubr.f32.vlgmr.msra.gmra.mxu1 %v458_v59 }
 0x1cc   : > { %v4419_v60 = vpop.f32.mrf.mxu1  ;;  %4510 = vmatpush3.msra.mxu1 %v775_v20 }
 0x1cd   : > { %4511 = vmatprep.subr.mxu1 %v774_v25  ;;  %v386_v60 = vld [vmem:[%s6854_s4 + $0x1] sm:$0x1] }
 0x1ce   : > { %4512 = vmatpush3.msra.mxu1 %v774_v25 }
 0x1cf   : > { %4513 = vmatprep.subr.mxu1 %v773_v27 }
 0x1d0   : > { %4514 = vmatpush3.msra.mxu1 %v773_v27  ;;  %v3650_v27 = vld [vmem:[%s6852_s2 + $0x168] sm:$0xff] }
 0x1d1   : > { %4515 = vmatprep.subr.mxu1 %v772_v29 }
 0x1d2   : > { %4516 = vmatpush3.msra.mxu1 %v772_v29 }
 0x1d3   : > { %4517 = vmatprep.subr.mxu1 %v771_v31 }
 0x1d4   : > { %4518 = vmatpush3.msra.mxu1 %v771_v31 }
 0x28b   : > { %v544_v0 = vpop.f32.mrf.mxu1 }
 0x28c   : > { %v551_v1 = vrot.slane %v544_v0, %v5572_v63 }
 0x28d   : > { %v4454_v2 = vpop.f32.mrf.mxu1 }
 0x28e   : > { %v5576_v3 = vsub.f32 %v5425_v33, %v551_v1  ;;  %v5579_v4 = vsub.f32 %v5427_v35, %v551_v1  ;;  %v5584_v6 = vsub.f32 %v5431_v36, %v551_v1  ;;  %v5589_v8 = vsub.f32 %v5435_v37, %v551_v1  ;;  %v770_v33 = vld [vmem:[%s6852_s2 + $0x50] sm:$0xff]  ;;  %v769_v35 = vld [vmem:[%s6852_s2 + $0x48] sm:$0xff]  ;;  %v3605_v36 = vld [vmem:[%s6852_s2 + $0xc0] sm:$0xff] }
 0x28f   : > { %v5595_v10 = vsub.f32 %v5439_v38, %v551_v1  ;;  %v5601_v12 = vsub.f32 %v5443_v39, %v551_v1  ;;  %v5607_v14 = vsub.f32 %v5447_v40, %v551_v1  ;;  %v5613_v16 = vsub.f32 %v5451_v41, %v551_v1  ;;  %4519 = vmatprep.subr.mxu1 %v770_v33  ;;  %v768_v37 = vld [vmem:[%s6852_s2 + $0x40] sm:$0xff]  ;;  %v3604_v38 = vld [vmem:[%s6852_s2 + $0xb8] sm:$0xff]  ;;  %v3603_v40 = vld [vmem:[%s6852_s2 + $0xb0] sm:$0xff] }
 0x290   : > { %v567_v5 = vmul.f32 %v5576_v3, %v5576_v3  ;;  %v566_v7 = vmul.f32 %v5579_v4, %v5579_v4  ;;  %v565_v9 = vmul.f32 %v5584_v6, %v5584_v6  ;;  %v564_v11 = vmul.f32 %v5589_v8, %v5589_v8  ;;  %4520 = vmatpush3.msra.mxu1 %v770_v33  ;;  %v767_v39 = vld [vmem:[%s6852_s2 + $0x38] sm:$0xff]  ;;  %v766_v41 = vld [vmem:[%s6852_s2 + $0x30] sm:$0xff]  ;;  %v3596_v1 = vld [vmem:[%s6854_s4 + $0x2] ss:$0 sm:$0xff] }
 0x291   : > { %v563_v13 = vmul.f32 %v5595_v10, %v5595_v10  ;;  %v562_v15 = vmul.f32 %v5601_v12, %v5601_v12  ;;  %v561_v17 = vmul.f32 %v5607_v14, %v5607_v14  ;;  %v560_v18 = vmul.f32 %v5613_v16, %v5613_v16  ;;  %4521 = vmatprep.subr.mxu1 %v769_v35 }
 0x292   : > { %4456 = vmatpush3.msra.mxu0 %v567_v5  ;;  %4522 = vmatpush3.msra.mxu1 %v769_v35 }
 0x293   : > { %4457 = vmatprep.subr.mxu0 %v5304_v24  ;;  %4523 = vmatprep.subr.mxu1 %v768_v37 }
 0x294   : > { %4458 = vmatpush3.msra.mxu0 %v566_v7  ;;  %4524 = vmatpush3.msra.mxu1 %v768_v37  ;;  %v3647_v37 = vld [vmem:[%s6852_s2 + $0x150] sm:$0xff] }
 0x295   : > { %4459 = vmatprep.subr.mxu0 %v5304_v24  ;;  %4525 = vmatprep.subr.mxu1 %v767_v39 }
 0x296   : > { %4460 = vmatpush3.msra.mxu0 %v565_v9  ;;  %4526 = vmatpush3.msra.mxu1 %v767_v39  ;;  %v3646_v39 = vld [vmem:[%s6852_s2 + $0x148] sm:$0xff] }
 0x297   : > { %4461 = vmatprep.subr.mxu0 %v5304_v24  ;;  %4527 = vmatprep.subr.mxu1 %v766_v41 }
 0x298   : > { %4462 = vmatpush3.msra.mxu0 %v564_v11  ;;  %4528 = vmatpush3.msra.mxu1 %v766_v41  ;;  %v3645_v41 = vld [vmem:[%s6852_s2 + $0x140] sm:$0xff] }
 0x299   : > { %4463 = vmatprep.subr.mxu0 %v5304_v24 }
 0x29a   : > { %4464 = vmatpush3.msra.mxu0 %v563_v13 }
 0x29b   : > { %4465 = vmatprep.subr.mxu0 %v5304_v24 }
 0x29c   : > { %4466 = vmatpush3.msra.mxu0 %v562_v15 }
 0x29d   : > { %4467 = vmatprep.subr.mxu0 %v5304_v24 }
 0x29e   : > { %4468 = vmatpush3.msra.mxu0 %v561_v17 }
 0x29f   : > { %4469 = vmatprep.subr.mxu0 %v5304_v24 }
 0x2a0   : > { %4470 = vmatpush3.msra.mxu0 %v560_v18 }
 0x2a1   : > { %4472 = vmatmul.mubr.msk.f32.vlgmr.msra.gmra.mxu0 %vm388_vm1, %v5306_v43  ;;  %4474 = vmatprep.subr.mxu0 %v5304_v24 }
 0x2a2   : > { %4475 = vmatpush3.msra.mxu0 %v5458_v42  ;;  %4506 = vmatprep.mubr.msk.f32.mxu0 %vm5305_vm0, %v5304_v24  ;;  %v3602_v42 = vld [vmem:[%s6852_s2 + $0xa8] sm:$0xff] }
 0x2a3   : > { %4476 = vmatprep.subr.mxu0 %v5304_v24 }
 0x2a4   : > { %4477 = vmatpush3.msra.mxu0 %v5467_v44  ;;  %v765_v44 = vld [vmem:[%s6852_s2 + $0x28] sm:$0xff] }
 0x2a5   : > { %4478 = vmatprep.subr.mxu0 %v5304_v24  ;;  %4529 = vmatprep.subr.mxu1 %v765_v44 }
 0x2a6   : > { %4479 = vmatpush3.msra.mxu0 %v5476_v45  ;;  %v3601_v45 = vld [vmem:[%s6852_s2 + $0xa0] sm:$0xff]  ;;  %4530 = vmatpush3.msra.mxu1 %v765_v44  ;;  %v3643_v44 = vld [vmem:[%s6852_s2 + $0x130] sm:$0xff] }
 0x2a7   : > { %4480 = vmatprep.subr.mxu0 %v5304_v24 }
 0x2a8   : > { %4481 = vmatpush3.msra.mxu0 %v5483_v46  ;;  %v764_v46 = vld [vmem:[%s6852_s2 + $0x20] sm:$0xff] }
 0x2a9   : > { %4482 = vmatprep.subr.mxu0 %v5304_v24  ;;  %4531 = vmatprep.subr.mxu1 %v764_v46 }
 0x2aa   : > { %4483 = vmatpush3.msra.mxu0 %v5490_v47  ;;  %v3600_v47 = vld [vmem:[%s6852_s2 + $0x98] sm:$0xff]  ;;  %4532 = vmatpush3.msra.mxu1 %v764_v46  ;;  %v3641_v46 = vld [vmem:[%s6852_s2 + $0x120] sm:$0xff] }
 0x2ab   : > { %4484 = vmatprep.subr.mxu0 %v5304_v24 }
 0x2ac   : > { %4485 = vmatpush3.msra.mxu0 %v5497_v48  ;;  %v763_v48 = vld [vmem:[%s6852_s2 + $0x18] sm:$0xff] }
 0x2ad   : > { %4486 = vmatprep.subr.mxu0 %v5304_v24  ;;  %4533 = vmatprep.subr.mxu1 %v763_v48 }
 0x2ae   : > { %4487 = vmatpush3.msra.mxu0 %v5504_v49  ;;  %v3599_v49 = vld [vmem:[%s6852_s2 + $0x90] sm:$0xff]  ;;  %4534 = vmatpush3.msra.mxu1 %v763_v48 }
 0x2af   : > { %4488 = vmatprep.subr.mxu0 %v5304_v24  ;;  %v3639_v48 = vld [vmem:[%s6852_s2 + $0x110] sm:$0xff] }
 0x2b0   : > { %4489 = vmatpush3.msra.mxu0 %v5511_v50  ;;  %v762_v50 = vld [vmem:[%s6852_s2 + $0x10] sm:$0xff] }
 0x2b1   : > { %4490 = vmatprep.subr.mxu0 %v5304_v24  ;;  %4535 = vmatprep.subr.mxu1 %v762_v50 }
 0x2b2   : > { %4491 = vmatpush3.msra.mxu0 %v5518_v51  ;;  %v3598_v51 = vld [vmem:[%s6852_s2 + $0x88] sm:$0xff]  ;;  %4536 = vmatpush3.msra.mxu1 %v762_v50  ;;  %v3637_v50 = vld [vmem:[%s6852_s2 + $0x100] sm:$0xff] }
 0x2b3   : > { %4492 = vmatprep.subr.mxu0 %v5304_v24 }
 0x2b4   : > { %4493 = vmatpush3.msra.mxu0 %v5525_v52  ;;  %v761_v52 = vld [vmem:[%s6852_s2 + $0x8] sm:$0xff] }
 0x2b5   : > { %4494 = vmatprep.subr.mxu0 %v5304_v24  ;;  %4537 = vmatprep.subr.mxu1 %v761_v52 }
 0x2b6   : > { %4495 = vmatpush3.msra.mxu0 %v5532_v53  ;;  %v3597_v53 = vld [vmem:[%s6852_s2 + $0x80] sm:$0xff]  ;;  %4538 = vmatpush3.msra.mxu1 %v761_v52 }
 0x2b7   : > { %4496 = vmatprep.subr.mxu0 %v5304_v24 }
 0x2b8   : > { %4497 = vmatpush3.msra.mxu0 %v5539_v54  ;;  %v760_v54 = vld [vmem:[%s6852_s2] sm:$0xff] }
 0x2b9   : > { %4498 = vmatprep.subr.mxu0 %v5304_v24  ;;  %4539 = vmatprep.subr.mxu1 %v760_v54 }
 0x2ba   : > { %4499 = vmatpush3.msra.mxu0 %v5546_v55  ;;  %v3652_v55 = vld [vmem:[%s6852_s2 + $0x178] sm:$0xff]  ;;  %4540 = vmatpush3.msra.mxu1 %v760_v54 }
 0x2bb   : > { %4500 = vmatprep.subr.mxu0 %v5304_v24 }
 0x2bc   : > { %4501 = vmatpush3.msra.mxu0 %v5553_v56 }
 0x2bd   : > { %4502 = vmatprep.subr.mxu0 %v5304_v24 }
 0x2be   : > { %4503 = vmatpush3.msra.mxu0 %v5560_v57 }
 0x2bf   : > { %4504 = vmatprep.subr.mxu0 %v5304_v24 }
 0x2c0   : > { %4505 = vmatpush3.msra.mxu0 %v5569_v58 }
 0x2c1   : > { %4553 = vmatprep.subr.mxu0 %v3612_v19 }
 0x361   : > { %v634_v21 = vpop.f32.mrf.mxu0 }
 0x362   : > { %4507 = vmatmul.mubr.f32.vlgmr.msra.gmra.mxu0 %v634_v21 }
 0x363   : > { %v4473_v22 = vpop.f32.mrf.mxu0  ;;  %4554 = vmatpush3.msra.mxu0 %v3612_v19 }
 0x364   : > { %4555 = vmatprep.subr.mxu0 %v3611_v23 }
 0x365   : > { %4556 = vmatpush3.msra.mxu0 %v3611_v23 }
 0x366   : > { %4557 = vmatprep.subr.mxu0 %v3610_v26 }
 0x367   : > { %4558 = vmatpush3.msra.mxu0 %v3610_v26 }
 0x368   : > { %4559 = vmatprep.subr.mxu0 %v3609_v28 }
 0x369   : > { %4560 = vmatpush3.msra.mxu0 %v3609_v28 }
 0x36a   : > { %4561 = vmatprep.subr.mxu0 %v3608_v30 }
 0x36b   : > { %4562 = vmatpush3.msra.mxu0 %v3608_v30 }
 0x36c   : > { %4563 = vmatprep.subr.mxu0 %v3607_v32 }
 0x36d   : > { %4564 = vmatpush3.msra.mxu0 %v3607_v32  ;;  %v3649_v32 = vld [vmem:[%s6852_s2 + $0x160] sm:$0xff] }
 0x36e   : > { %4565 = vmatprep.subr.mxu0 %v3606_v34 }
 0x36f   : > { %4566 = vmatpush3.msra.mxu0 %v3606_v34  ;;  %v3648_v34 = vld [vmem:[%s6852_s2 + $0x158] sm:$0xff] }
 0x370   : > { %4567 = vmatprep.subr.mxu0 %v3605_v36 }
 0x371   : > { %4568 = vmatpush3.msra.mxu0 %v3605_v36 }
 0x372   : > { %4569 = vmatprep.subr.mxu0 %v3604_v38 }
 0x373   : > { %4570 = vmatpush3.msra.mxu0 %v3604_v38 }
 0x374   : > { %4571 = vmatprep.subr.mxu0 %v3603_v40 }
 0x375   : > { %4572 = vmatpush3.msra.mxu0 %v3603_v40 }
 0x376   : > { %4573 = vmatprep.subr.mxu0 %v3602_v42 }
 0x377   : > { %4574 = vmatpush3.msra.mxu0 %v3602_v42  ;;  %v3644_v42 = vld [vmem:[%s6852_s2 + $0x138] sm:$0xff] }
 0x378   : > { %4575 = vmatprep.subr.mxu0 %v3601_v45 }
 0x379   : > { %4576 = vmatpush3.msra.mxu0 %v3601_v45  ;;  %v3642_v45 = vld [vmem:[%s6852_s2 + $0x128] sm:$0xff] }
 0x37a   : > { %4577 = vmatprep.subr.mxu0 %v3600_v47 }
 0x37b   : > { %4578 = vmatpush3.msra.mxu0 %v3600_v47  ;;  %v3640_v47 = vld [vmem:[%s6852_s2 + $0x118] sm:$0xff] }
 0x37c   : > { %4579 = vmatprep.subr.mxu0 %v3599_v49 }
 0x37d   : > { %4580 = vmatpush3.msra.mxu0 %v3599_v49  ;;  %v3638_v49 = vld [vmem:[%s6852_s2 + $0x108] sm:$0xff] }
 0x37e   : > { %4581 = vmatprep.subr.mxu0 %v3598_v51 }
 0x37f   : > { %4582 = vmatpush3.msra.mxu0 %v3598_v51  ;;  %v3613_v51 = vld [vmem:[%s6853_s3 + $0x40] sm:$0xff] }
 0x380   : > { %4583 = vmatprep.subr.mxu0 %v3597_v53 }
 0x381   : > { %4584 = vmatpush3.msra.mxu0 %v3597_v53 }
 0x382   : > { %4653 = vmatprep.subr.mxu0 %v3652_v55 }
 0x422   : > { %v704_v56 = vpop.f32.mrf.mxu0 }
 0x423   : > { %v708_v57 = vmax.f32 %v704_v56, 0.0 }
 0x424   : > { %v4508_v58 = vpop.f32.mrf.mxu0 }
 0x425   : > { %v709_v59 = vadd.f32 1e-05, %v708_v57 }
 0x427   : > { %5276 = vrsqrt.f32 %v709_v59 }
 0x434   : > { %v5277_v61 = vpop.eup %5276 }
 0x435   : > { %v711_v62 = vmul.f32 %v5277_v61, %v386_v60 }
 0x437   : > { %v715_v0 = vrot.slane %v711_v62, %v5572_v63 }
 0x439   : > { %v716_v2 = vmul.f32 %v715_v0, %v5613_v16  ;;  %v717_v5 = vmul.f32 %v715_v0, %v5607_v14  ;;  %v718_v7 = vmul.f32 %v715_v0, %v5601_v12  ;;  %v719_v9 = vmul.f32 %v715_v0, %v5595_v10 }
 0x43a   : > { %v720_v11 = vmul.f32 %v715_v0, %v5589_v8  ;;  %v721_v20 = vmul.f32 %v715_v0, %v5584_v6  ;;  %v722_v14 = vmul.f32 %v715_v0, %v5579_v4  ;;  %v3651_v6 = vld [vmem:[%s6852_s2 + $0x170] sm:$0xff]  ;;  %v723_v25 = vmul.f32 %v715_v0, %v5576_v3 }
 0x43b   : > { %v728_v13 = vadd.f32 %v3596_v1, %v716_v2  ;;  %v729_v15 = vadd.f32 %v3596_v1, %v717_v5  ;;  %v730_v17 = vadd.f32 %v3596_v1, %v718_v7  ;;  %v731_v18 = vadd.f32 %v3596_v1, %v719_v9  ;;  %v3614_v7 = vld [vmem:[%s6853_s3 + $0x48] sm:$0xff]  ;;  %v3615_v9 = vld [vmem:[%s6853_s3 + $0x50] sm:$0xff] }
 0x43c   : > { %v732_v19 = vadd.f32 %v3596_v1, %v720_v11  ;;  %v733_v23 = vadd.f32 %v3596_v1, %v721_v20  ;;  %v734_v28 = vadd.f32 %v3596_v1, %v722_v14  ;;  %v735_v30 = vadd.f32 %v3596_v1, %v723_v25  ;;  %v3619_v20 = vld [vmem:[%s6853_s3 + $0x70] sm:$0xff]  ;;  %v881_v14 = vld [vmem:[%s6853_s3] sm:$0xff] }
 0x43d   : > { %vm736_vm2 = vcmp.ge.f32.partialorder %v728_v13, 0.0  ;;  %v744_v21 = vmul.f32 0.01, %v728_v13  ;;  %vm737_vm3 = vcmp.ge.f32.partialorder %v729_v15, 0.0  ;;  %v745_v22 = vmul.f32 0.01, %v729_v15 }
 0x43e   : > { %vm738_vm4 = vcmp.ge.f32.partialorder %v730_v17, 0.0  ;;  %v746_v16 = vmul.f32 0.01, %v730_v17  ;;  %v747_v8 = vmul.f32 0.01, %v731_v18  ;;  %vm739_vm5 = vcmp.ge.f32.partialorder %v731_v18, 0.0 }
 0x43f   : > { %v5771_v12 = vsel %vm736_vm2, %v728_v13, %v744_v21  ;;  %v5773_v10 = vsel %vm737_vm3, %v729_v15, %v745_v22  ;;  %v748_v26 = vmul.f32 0.01, %v732_v19  ;;  %vm740_vm6 = vcmp.ge.f32.partialorder %v732_v19, 0.0  ;;  %v3616_v13 = vld [vmem:[%s6853_s3 + $0x58] sm:$0xff]  ;;  %v3617_v15 = vld [vmem:[%s6853_s3 + $0x60] sm:$0xff]  ;;  %v883_v25 = vld [vmem:[%s6853_s3 + $0x10] sm:$0xff] }
 0x440   : > { %4541 = vmatprep.mubr.f32.mxu1 %v5771_v12  ;;  %4585 = vmatprep.mubr.f32.mxu0 %v5771_v12  ;;  %v5783_v4 = vsel %vm738_vm4, %v730_v17, %v746_v16  ;;  %v5790_v3 = vsel %vm739_vm5, %v731_v18, %v747_v8  ;;  %v749_v29 = vmul.f32 0.01, %v733_v23  ;;  %vm741_vm7 = vcmp.ge.f32.partialorder %v733_v23, 0.0  ;;  %v3620_v16 = vld [vmem:[%s6853_s3 + $0x78] sm:$0xff] }
 0x441   : > { %4542 = vmatmul.mubr.f32.vlgmr.msra.gmra.mxu1 %v5773_v10  ;;  %4586 = vmatmul.mubr.f32.vlgmr.msra.gmra.mxu0 %v5773_v10  ;;  %v5793_v31 = vsel %vm740_vm6, %v732_v19, %v748_v26  ;;  %v750_v33 = vmul.f32 0.01, %v734_v28  ;;  %vm742_vm8 = vcmp.ge.f32.partialorder %v734_v28, 0.0  ;;  %v751_v36 = vmul.f32 0.01, %v735_v30  ;;  %v3618_v19 = vld [vmem:[%s6853_s3 + $0x68] sm:$0xff] }
 0x442   : > { %4654 = vmatpush3.msra.mxu0 %v3652_v55  ;;  %4544 = vmatprep.mubr.f32.mxu1 %v5783_v4  ;;  %v5804_v35 = vsel %vm741_vm7, %v733_v23, %v749_v29  ;;  %vm743_vm9 = vcmp.ge.f32.partialorder %v735_v30, 0.0  ;;  %v882_v23 = vld [vmem:[%s6853_s3 + $0x8] sm:$0xff]  ;;  %v885_v29 = vld [vmem:[%s6853_s3 + $0x20] sm:$0xff] }
 0x443   : > { %4588 = vmatprep.mubr.f32.mxu0 %v5783_v4  ;;  %4655 = vmatprep.subr.mxu0 %v3651_v6  ;;  %v5811_v38 = vsel %vm742_vm8, %v734_v28, %v750_v33  ;;  %v5818_v40 = vsel %vm743_vm9, %v735_v30, %v751_v36  ;;  %v884_v28 = vld [vmem:[%s6853_s3 + $0x18] sm:$0xff]  ;;  %v886_v30 = vld [vmem:[%s6853_s3 + $0x28] sm:$0xff] }
 0x444   : > { %4656 = vmatpush3.msra.mxu0 %v3651_v6  ;;  %v888_v33 = vld [vmem:[%s6853_s3 + $0x38] sm:$0xff]  ;;  %v3654_v36 = vld [vmem:[%s6853_s3 + $0x88] sm:$0xff] }
 0x445   : > { %4657 = vmatprep.subr.mxu0 %v3650_v27  ;;  %4545 = vmatmul.mubr.f32.gmra.mxu1 %v5790_v3 }
 0x446   : > { %4589 = vmatmul.mubr.f32.gmra.mxu0 %v5790_v3  ;;  %4547 = vmatprep.mubr.f32.mxu1 %v5793_v31 }
 0x447   : > { %4658 = vmatpush3.msra.mxu0 %v3650_v27  ;;  %4591 = vmatprep.mubr.f32.mxu0 %v5793_v31 }
 0x448   : > { %4659 = vmatprep.subr.mxu0 %v3649_v32 }
 0x449   : > { %4660 = vmatpush3.msra.mxu0 %v3649_v32  ;;  %4548 = vmatmul.mubr.f32.gmra.mxu1 %v5804_v35  ;;  %v887_v32 = vld [vmem:[%s6853_s3 + $0x30] sm:$0xff] }
 0x44a   : > { %4661 = vmatprep.subr.mxu0 %v3648_v34  ;;  %4592 = vmatmul.mubr.f32.gmra.mxu0 %v5804_v35 }
 0x44b   : > { %4662 = vmatpush3.msra.mxu0 %v3648_v34  ;;  %4550 = vmatprep.mubr.f32.mxu1 %v5811_v38  ;;  %v3653_v34 = vld [vmem:[%s6853_s3 + $0x80] sm:$0xff] }
 0x44c   : > { %4594 = vmatprep.mubr.f32.mxu0 %v5811_v38  ;;  %4663 = vmatprep.subr.mxu0 %v3647_v37 }
 0x44d   : > { %4664 = vmatpush3.msra.mxu0 %v3647_v37  ;;  %4551 = vmatmul.mubr.f32.gmra.mxu1 %v5818_v40  ;;  %v3684_v37 = vld [vmem:[%s6852_s2 + $0x1f8] sm:$0xff] }
 0x44e   : > { %4665 = vmatprep.subr.mxu0 %v3646_v39  ;;  %4595 = vmatmul.mubr.f32.gmra.mxu0 %v5818_v40 }
 0x44f   : > { %4666 = vmatpush3.msra.mxu0 %v3646_v39  ;;  %4685 = vmatprep.mubr.f32.mxu0 %v5771_v12  ;;  %v3655_v39 = vld [vmem:[%s6853_s3 + $0x90] sm:$0xff] }
 0x450   : > { %4667 = vmatprep.subr.mxu0 %v3645_v41  ;;  %4613 = vmatprep.mubr.msk.f32.mxu1 %vm388_vm1, %v3613_v51  ;;  %v3660_v51 = vld [vmem:[%s6853_s3 + $0xb8] sm:$0xff] }
 0x451   : > { %4668 = vmatpush3.msra.mxu0 %v3645_v41  ;;  %v3683_v41 = vld [vmem:[%s6852_s2 + $0x1f0] sm:$0xff] }
 0x452   : > { %4669 = vmatprep.subr.mxu0 %v3644_v42 }
 0x453   : > { %4670 = vmatpush3.msra.mxu0 %v3644_v42  ;;  %v3656_v42 = vld [vmem:[%s6853_s3 + $0x98] sm:$0xff] }
 0x454   : > { %4671 = vmatprep.subr.mxu0 %v3643_v44 }
 0x455   : > { %4672 = vmatpush3.msra.mxu0 %v3643_v44  ;;  %v3682_v44 = vld [vmem:[%s6852_s2 + $0x1e8] sm:$0xff] }
 0x456   : > { %4673 = vmatprep.subr.mxu0 %v3642_v45 }
 0x457   : > { %4674 = vmatpush3.msra.mxu0 %v3642_v45  ;;  %v3657_v45 = vld [vmem:[%s6853_s3 + $0xa0] sm:$0xff] }
 0x458   : > { %4675 = vmatprep.subr.mxu0 %v3641_v46 }
 0x459   : > { %4676 = vmatpush3.msra.mxu0 %v3641_v46  ;;  %v3681_v46 = vld [vmem:[%s6852_s2 + $0x1e0] sm:$0xff] }
 0x45a   : > { %4677 = vmatprep.subr.mxu0 %v3640_v47 }
 0x45b   : > { %4678 = vmatpush3.msra.mxu0 %v3640_v47  ;;  %v3658_v47 = vld [vmem:[%s6853_s3 + $0xa8] sm:$0xff] }
 0x45c   : > { %4679 = vmatprep.subr.mxu0 %v3639_v48 }
 0x45d   : > { %4680 = vmatpush3.msra.mxu0 %v3639_v48  ;;  %v3680_v48 = vld [vmem:[%s6852_s2 + $0x1d8] sm:$0xff] }
 0x45e   : > { %4681 = vmatprep.subr.mxu0 %v3638_v49 }
 0x45f   : > { %4682 = vmatpush3.msra.mxu0 %v3638_v49  ;;  %v3659_v49 = vld [vmem:[%s6853_s3 + $0xb0] sm:$0xff] }
 0x460   : > { %4683 = vmatprep.subr.mxu0 %v3637_v50 }
 0x461   : > { %4684 = vmatpush3.msra.mxu0 %v3637_v50  ;;  %v3679_v50 = vld [vmem:[%s6852_s2 + $0x1d0] sm:$0xff] }
 0x462   : > { %4686 = vmatmul.mubr.f32.vlgmr.msra.gmra.mxu0 %v5773_v10 }
 0x463   : > { %4688 = vmatprep.mubr.f32.mxu0 %v5783_v4 }
 0x466   : > { %4689 = vmatmul.mubr.f32.gmra.mxu0 %v5790_v3 }
 0x467   : > { %4691 = vmatprep.mubr.f32.mxu0 %v5793_v31 }
 0x46a   : > { %4692 = vmatmul.mubr.f32.gmra.mxu0 %v5804_v35 }
 0x46b   : > { %4694 = vmatprep.mubr.f32.mxu0 %v5811_v38 }
 0x46e   : > { %4695 = vmatmul.mubr.f32.gmra.mxu0 %v5818_v40 }
 0x501   : > { %v4587_v52 = vpop.f32.mrf.mxu0  ;;  %v5861_v54 = vpop.f32.mrf.mxu1 }
 0x503   : > { %v972_v53 = vpop.f32.mrf.mxu0  ;;  %v5863_v56 = vpop.f32.mrf.mxu1 }
 0x505   : > { %v4546_v59 = vpop.f32.mrf.mxu1 }
 0x506   : > { %v4590_v55 = vpop.f32.mrf.mxu0 }
 0x507   : > { %v852_v62 = vpop.f32.mrf.mxu1 }
 0x508   : > { %v982_v57 = vpop.f32.mrf.mxu0 }
 0x509   : > { %v4549_v1 = vpop.f32.mrf.mxu1 }
 0x50a   : > { %v4593_v58 = vpop.f32.mrf.mxu0 }
 0x50b   : > { %v862_v2 = vpop.f32.mrf.mxu1 }
 0x50c   : > { %v992_v60 = vpop.f32.mrf.mxu0 }
 0x50d   : > { %v4552_v5 = vpop.f32.mrf.mxu1 }
 0x50e   : > { %v4596_v61 = vpop.f32.mrf.mxu0 }
 0x50f   : > { %4597 = vmatprep.subr.mxu1 %v4596_v61  ;;  %v872_v11 = vpop.f32.mrf.mxu1 }
 0x510   : > { %v1002_v0 = vpop.f32.mrf.mxu0  ;;  %4598 = vmatpush3.msra.mxu1 %v4596_v61  ;;  %v3669_v61 = vld [vmem:[%s6852_s2 + $0x180] sm:$0xff] }
 0x511   : > { %4599 = vmatprep.subr.mxu1 %v1002_v0 }
 0x512   : > { %4600 = vmatpush3.msra.mxu1 %v1002_v0 }
 0x513   : > { %4601 = vmatprep.subr.mxu1 %v4593_v58 }
 0x514   : > { %4602 = vmatpush3.msra.mxu1 %v4593_v58  ;;  %v3672_v58 = vld [vmem:[%s6852_s2 + $0x198] sm:$0xff] }
 0x515   : > { %4603 = vmatprep.subr.mxu1 %v992_v60 }
 0x516   : > { %4604 = vmatpush3.msra.mxu1 %v992_v60  ;;  %v3670_v60 = vld [vmem:[%s6852_s2 + $0x188] sm:$0xff] }
 0x517   : > { %4605 = vmatprep.subr.mxu1 %v4590_v55 }
 0x518   : > { %4606 = vmatpush3.msra.mxu1 %v4590_v55  ;;  %v3675_v55 = vld [vmem:[%s6852_s2 + $0x1b0] sm:$0xff] }
 0x519   : > { %4607 = vmatprep.subr.mxu1 %v982_v57 }
 0x51a   : > { %4608 = vmatpush3.msra.mxu1 %v982_v57  ;;  %v3673_v57 = vld [vmem:[%s6852_s2 + $0x1a0] sm:$0xff] }
 0x51b   : > { %4609 = vmatprep.subr.mxu1 %v4587_v52 }
 0x51c   : > { %4610 = vmatpush3.msra.mxu1 %v4587_v52  ;;  %v3678_v52 = vld [vmem:[%s6852_s2 + $0x1c8] sm:$0xff] }
 0x51d   : > { %4611 = vmatprep.subr.mxu1 %v972_v53 }
 0x51e   : > { %4612 = vmatpush3.msra.mxu1 %v972_v53  ;;  %v3677_v53 = vld [vmem:[%s6852_s2 + $0x1c0] sm:$0xff] }
 0x51f   : > { %4614 = vmatmul.mubr.msk.f32.vlgmr.msra.gmra.mxu1 %vm388_vm1, %v3614_v7  ;;  %4625 = vmatprep.subr.mxu1 %v4552_v5 }
 0x520   : > { %4626 = vmatpush3.msra.mxu1 %v4552_v5  ;;  %4616 = vmatprep.mubr.msk.f32.mxu1 %vm388_vm1, %v3615_v9 }
 0x521   : > { %4627 = vmatprep.subr.mxu1 %v872_v11 }
 0x522   : > { %v4687_v17 = vpop.f32.mrf.mxu0  ;;  %4628 = vmatpush3.msra.mxu1 %v872_v11 }
 0x523   : > { %4617 = vmatmul.mubr.msk.f32.gmra.mxu1 %vm388_vm1, %v3616_v13  ;;  %4629 = vmatprep.subr.mxu1 %v4549_v1 }
 0x524   : > { %v1361_v18 = vpop.f32.mrf.mxu0  ;;  %4630 = vmatpush3.msra.mxu1 %v4549_v1  ;;  %4619 = vmatprep.mubr.msk.f32.mxu1 %vm388_vm1, %v3617_v15 }
 0x525   : > { %4631 = vmatprep.subr.mxu1 %v862_v2 }
 0x526   : > { %v4690_v21 = vpop.f32.mrf.mxu0  ;;  %4632 = vmatpush3.msra.mxu1 %v862_v2 }
 0x527   : > { %4620 = vmatmul.mubr.msk.f32.gmra.mxu1 %vm388_vm1, %v3618_v19  ;;  %4633 = vmatprep.subr.mxu1 %v4546_v59 }
 0x528   : > { %v1371_v22 = vpop.f32.mrf.mxu0  ;;  %4634 = vmatpush3.msra.mxu1 %v4546_v59  ;;  %4622 = vmatprep.mubr.msk.f32.mxu1 %vm388_vm1, %v3619_v20  ;;  %v3671_v59 = vld [vmem:[%s6852_s2 + $0x190] sm:$0xff] }
 0x529   : > { %4635 = vmatprep.subr.mxu1 %v852_v62 }
 0x52a   : > { %v4693_v6 = vpop.f32.mrf.mxu0  ;;  %4636 = vmatpush3.msra.mxu1 %v852_v62  ;;  %v3685_v62 = vld [vmem:[%s6853_s3 + $0xc0] sm:$0xff] }
 0x52b   : > { %4623 = vmatmul.mubr.msk.f32.gmra.mxu1 %vm388_vm1, %v3620_v16  ;;  %4637 = vmatprep.subr.mxu1 %v5861_v54 }
 0x52c   : > { %v1381_v8 = vpop.f32.mrf.mxu0  ;;  %4638 = vmatpush3.msra.mxu1 %v5861_v54  ;;  %4641 = vmatprep.mubr.msk.f32.mxu1 %vm388_vm1, %v881_v14  ;;  %v3676_v54 = vld [vmem:[%s6852_s2 + $0x1b8] sm:$0xff] }
 0x52d   : > { %4639 = vmatprep.subr.mxu1 %v5863_v56  ;;  %4785 = vmatprep.mubr.msk.f32.mxu0 %vm388_vm1, %v3685_v62  ;;  %v3688_v62 = vld [vmem:[%s6853_s3 + $0xd8] sm:$0xff] }
 0x52e   : > { %v4696_v26 = vpop.f32.mrf.mxu0  ;;  %4640 = vmatpush3.msra.mxu1 %v5863_v56  ;;  %v3674_v56 = vld [vmem:[%s6852_s2 + $0x1a8] sm:$0xff] }
 0x52f   : > { %4642 = vmatmul.mubr.msk.f32.vlgmr.msra.gmra.mxu1 %vm388_vm1, %v882_v23  ;;  %4697 = vmatprep.subr.mxu1 %v4696_v26 }
 0x530   : > { %v1391_v27 = vpop.f32.mrf.mxu0  ;;  %4698 = vmatpush3.msra.mxu1 %v4696_v26  ;;  %4644 = vmatprep.mubr.msk.f32.mxu1 %vm388_vm1, %v883_v25 }
 0x531   : > { %4699 = vmatprep.subr.mxu1 %v1391_v27 }
 0x532   : > { %4700 = vmatpush3.msra.mxu1 %v1391_v27 }
 0x533   : > { %4645 = vmatmul.mubr.msk.f32.gmra.mxu1 %vm388_vm1, %v884_v28  ;;  %4701 = vmatprep.subr.mxu1 %v4693_v6 }
 0x534   : > { %4702 = vmatpush3.msra.mxu1 %v4693_v6  ;;  %4647 = vmatprep.mubr.msk.f32.mxu1 %vm388_vm1, %v885_v29 }
 0x535   : > { %4703 = vmatprep.subr.mxu1 %v1381_v8 }
 0x536   : > { %4704 = vmatpush3.msra.mxu1 %v1381_v8 }
 0x537   : > { %4648 = vmatmul.mubr.msk.f32.gmra.mxu1 %vm388_vm1, %v886_v30  ;;  %4705 = vmatprep.subr.mxu1 %v4690_v21 }
 0x538   : > { %4706 = vmatpush3.msra.mxu1 %v4690_v21  ;;  %4650 = vmatprep.mubr.msk.f32.mxu1 %vm388_vm1, %v887_v32 }
 0x539   : > { %4707 = vmatprep.subr.mxu1 %v1371_v22 }
 0x53a   : > { %4708 = vmatpush3.msra.mxu1 %v1371_v22 }
 0x53b   : > { %4651 = vmatmul.mubr.msk.f32.gmra.mxu1 %vm388_vm1, %v888_v33  ;;  %4709 = vmatprep.subr.mxu1 %v4687_v17 }
 0x53c   : > { %4710 = vmatpush3.msra.mxu1 %v4687_v17  ;;  %4713 = vmatprep.mubr.msk.f32.mxu1 %vm388_vm1, %v3653_v34 }
 0x53d   : > { %4711 = vmatprep.subr.mxu1 %v1361_v18 }
 0x53e   : > { %4712 = vmatpush3.msra.mxu1 %v1361_v18 }
 0x53f   : > { %4714 = vmatmul.mubr.msk.f32.vlgmr.msra.gmra.mxu1 %vm388_vm1, %v3654_v36  ;;  %4725 = vmatprep.subr.mxu1 %v3684_v37 }
 0x540   : > { %4726 = vmatpush3.msra.mxu1 %v3684_v37  ;;  %4716 = vmatprep.mubr.msk.f32.mxu1 %vm388_vm1, %v3655_v39 }
 0x541   : > { %4727 = vmatprep.subr.mxu1 %v3683_v41 }
 0x542   : > { %4728 = vmatpush3.msra.mxu1 %v3683_v41 }
 0x543   : > { %4717 = vmatmul.mubr.msk.f32.gmra.mxu1 %vm388_vm1, %v3656_v42  ;;  %4729 = vmatprep.subr.mxu1 %v3682_v44 }
 0x544   : > { %4730 = vmatpush3.msra.mxu1 %v3682_v44  ;;  %4719 = vmatprep.mubr.msk.f32.mxu1 %vm388_vm1, %v3657_v45 }
 0x545   : > { %4731 = vmatprep.subr.mxu1 %v3681_v46 }
 0x546   : > { %4732 = vmatpush3.msra.mxu1 %v3681_v46 }
 0x547   : > { %4720 = vmatmul.mubr.msk.f32.gmra.mxu1 %vm388_vm1, %v3658_v47  ;;  %4733 = vmatprep.subr.mxu1 %v3680_v48 }
 0x548   : > { %4734 = vmatpush3.msra.mxu1 %v3680_v48  ;;  %4722 = vmatprep.mubr.msk.f32.mxu1 %vm388_vm1, %v3659_v49 }
 0x549   : > { %4735 = vmatprep.subr.mxu1 %v3679_v50 }
 0x54a   : > { %4736 = vmatpush3.msra.mxu1 %v3679_v50 }
 0x54b   : > { %4723 = vmatmul.mubr.msk.f32.gmra.mxu1 %vm388_vm1, %v3660_v51  ;;  %4737 = vmatprep.subr.mxu1 %v3678_v52 }
 0x54c   : > { %4738 = vmatpush3.msra.mxu1 %v3678_v52  ;;  %4757 = vmatprep.mubr.f32.mxu1 %v5771_v12 }
 0x54d   : > { %4739 = vmatprep.subr.mxu1 %v3677_v53 }
 0x54e   : > { %4740 = vmatpush3.msra.mxu1 %v3677_v53 }
 0x54f   : > { %4741 = vmatprep.subr.mxu1 %v3676_v54 }
 0x550   : > { %4742 = vmatpush3.msra.mxu1 %v3676_v54 }
 0x551   : > { %4743 = vmatprep.subr.mxu1 %v3675_v55 }
 0x552   : > { %4744 = vmatpush3.msra.mxu1 %v3675_v55 }
 0x553   : > { %4745 = vmatprep.subr.mxu1 %v3674_v56 }
 0x554   : > { %4746 = vmatpush3.msra.mxu1 %v3674_v56 }
 0x555   : > { %4747 = vmatprep.subr.mxu1 %v3673_v57 }
 0x556   : > { %4748 = vmatpush3.msra.mxu1 %v3673_v57 }
 0x557   : > { %4749 = vmatprep.subr.mxu1 %v3672_v58 }
 0x558   : > { %4750 = vmatpush3.msra.mxu1 %v3672_v58  ;;  %v3686_v58 = vld [vmem:[%s6853_s3 + $0xc8] sm:$0xff] }
 0x559   : > { %4751 = vmatprep.subr.mxu1 %v3671_v59 }
 0x55a   : > { %4752 = vmatpush3.msra.mxu1 %v3671_v59  ;;  %v3716_v59 = vld [vmem:[%s6852_s2 + $0x278] sm:$0xff] }
 0x55b   : > { %4753 = vmatprep.subr.mxu1 %v3670_v60 }
 0x55c   : > { %4754 = vmatpush3.msra.mxu1 %v3670_v60  ;;  %v3687_v60 = vld [vmem:[%s6853_s3 + $0xd0] sm:$0xff] }
 0x55d   : > { %4755 = vmatprep.subr.mxu1 %v3669_v61 }
 0x55e   : > { %4756 = vmatpush3.msra.mxu1 %v3669_v61  ;;  %v3715_v61 = vld [vmem:[%s6852_s2 + $0x270] sm:$0xff] }
 0x55f   : > { %4758 = vmatmul.mubr.f32.vlgmr.msra.gmra.mxu1 %v5773_v10 }
 0x560   : > { %4760 = vmatprep.mubr.f32.mxu1 %v5783_v4 }
 0x563   : > { %4761 = vmatmul.mubr.f32.gmra.mxu1 %v5790_v3 }
 0x564   : > { %4763 = vmatprep.mubr.f32.mxu1 %v5793_v31 }
 0x567   : > { %4764 = vmatmul.mubr.f32.gmra.mxu1 %v5804_v35 }
 0x568   : > { %4766 = vmatprep.mubr.f32.mxu1 %v5811_v38 }
 0x56b   : > { %4767 = vmatmul.mubr.f32.gmra.mxu1 %v5818_v40 }
 0x5df   : > { %v4615_v0 = vpop.f32.mrf.mxu1 }
 0x5e1   : > { %v1110_v1 = vpop.f32.mrf.mxu1 }
 0x5e3   : > { %v4618_v2 = vpop.f32.mrf.mxu1 }
 0x5e5   : > { %v1120_v5 = vpop.f32.mrf.mxu1 }
 0x5e7   : > { %v4621_v7 = vpop.f32.mrf.mxu1 }
 0x5e9   : > { %v1130_v9 = vpop.f32.mrf.mxu1 }
 0x5eb   : > { %v4624_v11 = vpop.f32.mrf.mxu1 }
 0x5ed   : > { %v1140_v13 = vpop.f32.mrf.mxu1 }
 0x5ef   : > { %v4643_v15 = vpop.f32.mrf.mxu1 }
 0x5f0   : > { %v1245_v17 = vadd.f32 %v4643_v15, %v4615_v0  ;;  %v3714_v0 = vld [vmem:[%s6852_s2 + $0x268] sm:$0xff] }
 0x5f1   : > { %v1239_v18 = vpop.f32.mrf.mxu1  ;;  %v3710_v15 = vld [vmem:[%s6852_s2 + $0x248] sm:$0xff] }
 0x5f2   : > { %v1240_v19 = vadd.f32 %v1239_v18, %v1110_v1  ;;  %v3689_v1 = vld [vmem:[%s6853_s3 + $0xe0] sm:$0xff]  ;;  %v3708_v18 = vld [vmem:[%s6852_s2 + $0x238] sm:$0xff] }
 0x5f3   : > { %v4646_v20 = vpop.f32.mrf.mxu1 }
 0x5f4   : > { %v1255_v21 = vadd.f32 %v4646_v20, %v4618_v2  ;;  %v3713_v2 = vld [vmem:[%s6852_s2 + $0x260] sm:$0xff]  ;;  %v3706_v20 = vld [vmem:[%s6852_s2 + $0x228] sm:$0xff] }
 0x5f5   : > { %v1249_v22 = vpop.f32.mrf.mxu1 }
 0x5f6   : > { %v1250_v16 = vadd.f32 %v1249_v22, %v1120_v5  ;;  %v3690_v5 = vld [vmem:[%s6853_s3 + $0xe8] sm:$0xff]  ;;  %v3704_v22 = vld [vmem:[%s6852_s2 + $0x218] sm:$0xff] }
 0x5f7   : > { %v4649_v14 = vpop.f32.mrf.mxu1 }
 0x5f8   : > { %v1265_v6 = vadd.f32 %v4649_v14, %v4621_v7  ;;  %v3712_v7 = vld [vmem:[%s6852_s2 + $0x258] sm:$0xff]  ;;  %v3702_v14 = vld [vmem:[%s6852_s2 + $0x208] sm:$0xff] }
 0x5f9   : > { %v1259_v8 = vpop.f32.mrf.mxu1 }
 0x5fa   : > { %v1260_v23 = vadd.f32 %v1259_v8, %v1130_v9  ;;  %v3691_v9 = vld [vmem:[%s6853_s3 + $0xf0] sm:$0xff]  ;;  %v3717_v8 = vld [vmem:[%s6853_s3 + $0x100] sm:$0xff] }
 0x5fb   : > { %v4652_v25 = vpop.f32.mrf.mxu1  ;;  %4857 = vmatprep.mubr.msk.f32.mxu1 %vm388_vm1, %v3717_v8 }
 0x5fc   : > { %v1275_v26 = vadd.f32 %v4652_v25, %v4624_v11  ;;  %v3711_v11 = vld [vmem:[%s6852_s2 + $0x250] sm:$0xff] }
 0x5fd   : > { %v1269_v27 = vpop.f32.mrf.mxu1 }
 0x5fe   : > { %v1270_v28 = vadd.f32 %v1269_v27, %v1140_v13  ;;  %v3692_v13 = vld [vmem:[%s6853_s3 + $0xf8] sm:$0xff] }
 0x5ff   : > { %v4715_v29 = vpop.f32.mrf.mxu1 }
 0x600   : > { %v6021_v30 = vadd.f32 %v4715_v29, %v1245_v17  ;;  %v3709_v17 = vld [vmem:[%s6852_s2 + $0x240] sm:$0xff] }
 0x601   : > { %v1499_v32 = vpop.f32.mrf.mxu1 }
 0x602   : > { %v6023_v33 = vadd.f32 %v1499_v32, %v1240_v19  ;;  %v3707_v19 = vld [vmem:[%s6852_s2 + $0x230] sm:$0xff] }
 0x603   : > { %v4718_v34 = vpop.f32.mrf.mxu1 }
 0x604   : > { %v6025_v36 = vadd.f32 %v4718_v34, %v1255_v21  ;;  %v3705_v21 = vld [vmem:[%s6852_s2 + $0x220] sm:$0xff] }
 0x605   : > { %v1509_v37 = vpop.f32.mrf.mxu1 }
 0x606   : > { %v6027_v39 = vadd.f32 %v1509_v37, %v1250_v16  ;;  %v3703_v16 = vld [vmem:[%s6852_s2 + $0x210] sm:$0xff] }
 0x607   : > { %v4721_v41 = vpop.f32.mrf.mxu1 }
 0x608   : > { %v6029_v42 = vadd.f32 %v4721_v41, %v1265_v6  ;;  %v3701_v6 = vld [vmem:[%s6852_s2 + $0x200] sm:$0xff] }
 0x609   : > { %v1519_v44 = vpop.f32.mrf.mxu1 }
 0x60a   : > { %v6031_v45 = vadd.f32 %v1519_v44, %v1260_v23 }
 0x60b   : > { %v4724_v46 = vpop.f32.mrf.mxu1 }
 0x60c   : > { %v6033_v47 = vadd.f32 %v4724_v46, %v1275_v26 }
 0x60d   : > { %v1529_v48 = vpop.f32.mrf.mxu1 }
 0x60e   : > { %v6035_v49 = vadd.f32 %v1529_v48, %v1270_v28 }
 0x61f   : > { %v4759_v50 = vpop.f32.mrf.mxu1 }
 0x621   : > { %v1629_v51 = vpop.f32.mrf.mxu1 }
 0x623   : > { %v4762_v52 = vpop.f32.mrf.mxu1 }
 0x625   : > { %v1639_v53 = vpop.f32.mrf.mxu1 }
 0x627   : > { %v4765_v54 = vpop.f32.mrf.mxu1 }
 0x629   : > { %v1649_v55 = vpop.f32.mrf.mxu1 }
 0x62b   : > { %v4768_v56 = vpop.f32.mrf.mxu1 }
 0x62c   : > { %4769 = vmatprep.subr.mxu0 %v4768_v56 }
 0x62d   : > { %v1659_v57 = vpop.f32.mrf.mxu1  ;;  %4770 = vmatpush3.msra.mxu0 %v4768_v56  ;;  %v3747_v56 = vld [vmem:[%s6852_s2 + $0x2f0] sm:$0xff] }
 0x62e   : > { %4771 = vmatprep.subr.mxu0 %v1659_v57 }
 0x62f   : > { %4772 = vmatpush3.msra.mxu0 %v1659_v57  ;;  %v3720_v57 = vld [vmem:[%s6853_s3 + $0x118] sm:$0xff] }
 0x630   : > { %4773 = vmatprep.subr.mxu0 %v4765_v54 }
 0x631   : > { %4774 = vmatpush3.msra.mxu0 %v4765_v54 }
 0x632   : > { %4775 = vmatprep.subr.mxu0 %v1649_v55 }
 0x633   : > { %4776 = vmatpush3.msra.mxu0 %v1649_v55 }
 0x634   : > { %4777 = vmatprep.subr.mxu0 %v4762_v52 }
 0x635   : > { %4778 = vmatpush3.msra.mxu0 %v4762_v52 }
 0x636   : > { %4779 = vmatprep.subr.mxu0 %v1639_v53 }
 0x637   : > { %4780 = vmatpush3.msra.mxu0 %v1639_v53 }
 0x638   : > { %4781 = vmatprep.subr.mxu0 %v4759_v50 }
 0x639   : > { %4782 = vmatpush3.msra.mxu0 %v4759_v50 }
 0x63a   : > { %4783 = vmatprep.subr.mxu0 %v1629_v51 }
 0x63b   : > { %4784 = vmatpush3.msra.mxu0 %v1629_v51 }
 0x63c   : > { %4786 = vmatmul.mubr.msk.f32.vlgmr.msra.gmra.mxu0 %vm388_vm1, %v3686_v58  ;;  %4797 = vmatprep.subr.mxu0 %v3716_v59  ;;  %v3746_v58 = vld [vmem:[%s6852_s2 + $0x2e8] sm:$0xff] }
 0x63d   : > { %4798 = vmatpush3.msra.mxu0 %v3716_v59  ;;  %4788 = vmatprep.mubr.msk.f32.mxu0 %vm388_vm1, %v3687_v60  ;;  %v3721_v59 = vld [vmem:[%s6853_s3 + $0x120] sm:$0xff] }
 0x63e   : > { %4799 = vmatprep.subr.mxu0 %v3715_v61  ;;  %v3745_v60 = vld [vmem:[%s6852_s2 + $0x2e0] sm:$0xff] }
 0x63f   : > { %4800 = vmatpush3.msra.mxu0 %v3715_v61  ;;  %v3722_v61 = vld [vmem:[%s6853_s3 + $0x128] sm:$0xff] }
 0x640   : > { %4789 = vmatmul.mubr.msk.f32.gmra.mxu0 %vm388_vm1, %v3688_v62  ;;  %4801 = vmatprep.subr.mxu0 %v3714_v0  ;;  %v3744_v62 = vld [vmem:[%s6852_s2 + $0x2d8] sm:$0xff] }
 0x641   : > { %4802 = vmatpush3.msra.mxu0 %v3714_v0  ;;  %4791 = vmatprep.mubr.msk.f32.mxu0 %vm388_vm1, %v3689_v1  ;;  %v3723_v0 = vld [vmem:[%s6853_s3 + $0x130] sm:$0xff] }
 0x642   : > { %4803 = vmatprep.subr.mxu0 %v3713_v2  ;;  %v3743_v1 = vld [vmem:[%s6852_s2 + $0x2d0] sm:$0xff] }
 0x643   : > { %4804 = vmatpush3.msra.mxu0 %v3713_v2  ;;  %v3724_v2 = vld [vmem:[%s6853_s3 + $0x138] sm:$0xff] }
 0x644   : > { %4792 = vmatmul.mubr.msk.f32.gmra.mxu0 %vm388_vm1, %v3690_v5  ;;  %4805 = vmatprep.subr.mxu0 %v3712_v7  ;;  %v3742_v5 = vld [vmem:[%s6852_s2 + $0x2c8] sm:$0xff] }
 0x645   : > { %4806 = vmatpush3.msra.mxu0 %v3712_v7  ;;  %4794 = vmatprep.mubr.msk.f32.mxu0 %vm388_vm1, %v3691_v9  ;;  %v3741_v7 = vld [vmem:[%s6852_s2 + $0x2c0] sm:$0xff]  ;;  %v3740_v9 = vld [vmem:[%s6852_s2 + $0x2b8] sm:$0xff] }
 0x646   : > { %4807 = vmatprep.subr.mxu0 %v3711_v11 }
 0x647   : > { %4808 = vmatpush3.msra.mxu0 %v3711_v11  ;;  %v3739_v11 = vld [vmem:[%s6852_s2 + $0x2b0] sm:$0xff] }
 0x648   : > { %4795 = vmatmul.mubr.msk.f32.gmra.mxu0 %vm388_vm1, %v3692_v13  ;;  %4809 = vmatprep.subr.mxu0 %v3710_v15  ;;  %v3738_v13 = vld [vmem:[%s6852_s2 + $0x2a8] sm:$0xff] }
 0x649   : > { %4810 = vmatpush3.msra.mxu0 %v3710_v15  ;;  %4829 = vmatprep.mubr.f32.mxu0 %v5771_v12  ;;  %v3737_v15 = vld [vmem:[%s6852_s2 + $0x2a0] sm:$0xff] }
 0x64a   : > { %4811 = vmatprep.subr.mxu0 %v3709_v17 }
 0x64b   : > { %4812 = vmatpush3.msra.mxu0 %v3709_v17  ;;  %v3736_v17 = vld [vmem:[%s6852_s2 + $0x298] sm:$0xff] }
 0x64c   : > { %4813 = vmatprep.subr.mxu0 %v3708_v18 }
 0x64d   : > { %4814 = vmatpush3.msra.mxu0 %v3708_v18  ;;  %v3735_v18 = vld [vmem:[%s6852_s2 + $0x290] sm:$0xff] }
 0x64e   : > { %4815 = vmatprep.subr.mxu0 %v3707_v19 }
 0x64f   : > { %4816 = vmatpush3.msra.mxu0 %v3707_v19  ;;  %v3734_v19 = vld [vmem:[%s6852_s2 + $0x288] sm:$0xff] }
 0x650   : > { %4817 = vmatprep.subr.mxu0 %v3706_v20 }
 0x651   : > { %4818 = vmatpush3.msra.mxu0 %v3706_v20  ;;  %v3733_v20 = vld [vmem:[%s6852_s2 + $0x280] sm:$0xff] }
 0x652   : > { %4819 = vmatprep.subr.mxu0 %v3705_v21 }
 0x653   : > { %4820 = vmatpush3.msra.mxu0 %v3705_v21  ;;  %v3749_v21 = vld [vmem:[%s6853_s3 + $0x140] sm:$0xff] }
 0x654   : > { %4821 = vmatprep.subr.mxu0 %v3704_v22 }
 0x655   : > { %4822 = vmatpush3.msra.mxu0 %v3704_v22 }
 0x656   : > { %4823 = vmatprep.subr.mxu0 %v3703_v16 }
 0x657   : > { %4824 = vmatpush3.msra.mxu0 %v3703_v16 }
 0x658   : > { %4825 = vmatprep.subr.mxu0 %v3702_v14 }
 0x659   : > { %4826 = vmatpush3.msra.mxu0 %v3702_v14 }
 0x65a   : > { %4827 = vmatprep.subr.mxu0 %v3701_v6 }
 0x65b   : > { %4828 = vmatpush3.msra.mxu0 %v3701_v6 }
 0x65c   : > { %4830 = vmatmul.mubr.f32.vlgmr.msra.gmra.mxu0 %v5773_v10 }
 0x65d   : > { %4832 = vmatprep.mubr.f32.mxu0 %v5783_v4 }
 0x660   : > { %4833 = vmatmul.mubr.f32.gmra.mxu0 %v5790_v3 }
 0x661   : > { %4835 = vmatprep.mubr.f32.mxu0 %v5793_v31 }
 0x664   : > { %4836 = vmatmul.mubr.f32.gmra.mxu0 %v5804_v35 }
 0x665   : > { %4838 = vmatprep.mubr.f32.mxu0 %v5811_v38 }
 0x668   : > { %4839 = vmatmul.mubr.f32.gmra.mxu0 %v5818_v40 }
 0x669   : > { %4929 = vmatprep.mubr.msk.f32.mxu0 %vm388_vm1, %v3749_v21 }
 0x6fc   : > { %v4787_v23 = vpop.f32.mrf.mxu0 }
 0x6fd   : > { %v6126_v25 = vadd.f32 %v4787_v23, %v6021_v30 }
 0x6fe   : > { %v1767_v26 = vpop.f32.mrf.mxu0 }
 0x6ff   : > { %v6129_v27 = vadd.f32 %v1767_v26, %v6023_v33 }
 0x700   : > { %v4790_v28 = vpop.f32.mrf.mxu0 }
 0x701   : > { %v6132_v29 = vadd.f32 %v4790_v28, %v6025_v36 }
 0x702   : > { %v1777_v32 = vpop.f32.mrf.mxu0 }
 0x703   : > { %v6135_v34 = vadd.f32 %v1777_v32, %v6027_v39 }
 0x704   : > { %v4793_v37 = vpop.f32.mrf.mxu0 }
 0x705   : > { %v6138_v41 = vadd.f32 %v4793_v37, %v6029_v42 }
 0x706   : > { %v1787_v44 = vpop.f32.mrf.mxu0 }
 0x707   : > { %v6141_v30 = vadd.f32 %v1787_v44, %v6031_v45  ;;  %v3718_v45 = vld [vmem:[%s6853_s3 + $0x108] sm:$0xff] }
 0x708   : > { %v4796_v46 = vpop.f32.mrf.mxu0 }
 0x709   : > { %v6144_v33 = vadd.f32 %v4796_v46, %v6033_v47  ;;  %v3748_v47 = vld [vmem:[%s6852_s2 + $0x2f8] sm:$0xff] }
 0x70a   : > { %v1797_v48 = vpop.f32.mrf.mxu0 }
 0x70b   : > { %v6147_v36 = vadd.f32 %v1797_v48, %v6035_v49  ;;  %v3719_v49 = vld [vmem:[%s6853_s3 + $0x110] sm:$0xff] }
 0x71c   : > { %v4831_v50 = vpop.f32.mrf.mxu0 }
 0x71e   : > { %v1897_v51 = vpop.f32.mrf.mxu0 }
 0x720   : > { %v4834_v39 = vpop.f32.mrf.mxu0 }
 0x722   : > { %v1907_v52 = vpop.f32.mrf.mxu0 }
 0x724   : > { %v4837_v53 = vpop.f32.mrf.mxu0 }
 0x726   : > { %v1917_v54 = vpop.f32.mrf.mxu0 }
 0x728   : > { %v4840_v42 = vpop.f32.mrf.mxu0 }
 0x729   : > { %4841 = vmatprep.subr.mxu1 %v4840_v42 }
 0x72a   : > { %v1927_v55 = vpop.f32.mrf.mxu0  ;;  %4842 = vmatpush3.msra.mxu1 %v4840_v42  ;;  %v3779_v42 = vld [vmem:[%s6852_s2 + $0x370] sm:$0xff] }
 0x72b   : > { %4843 = vmatprep.subr.mxu1 %v1927_v55 }
 0x72c   : > { %4844 = vmatpush3.msra.mxu1 %v1927_v55  ;;  %v3752_v55 = vld [vmem:[%s6853_s3 + $0x158] sm:$0xff] }
 0x72d   : > { %4845 = vmatprep.subr.mxu1 %v4837_v53 }
 0x72e   : > { %4846 = vmatpush3.msra.mxu1 %v4837_v53 }
 0x72f   : > { %4847 = vmatprep.subr.mxu1 %v1917_v54 }
 0x730   : > { %4848 = vmatpush3.msra.mxu1 %v1917_v54 }
 0x731   : > { %4849 = vmatprep.subr.mxu1 %v4834_v39 }
 0x732   : > { %4850 = vmatpush3.msra.mxu1 %v4834_v39 }
 0x733   : > { %4851 = vmatprep.subr.mxu1 %v1907_v52 }
 0x734   : > { %4852 = vmatpush3.msra.mxu1 %v1907_v52 }
 0x735   : > { %4853 = vmatprep.subr.mxu1 %v4831_v50 }
 0x736   : > { %4854 = vmatpush3.msra.mxu1 %v4831_v50 }
 0x737   : > { %4855 = vmatprep.subr.mxu1 %v1897_v51 }
 0x738   : > { %4856 = vmatpush3.msra.mxu1 %v1897_v51 }
 0x739   : > { %4858 = vmatmul.mubr.msk.f32.vlgmr.msra.gmra.mxu1 %vm388_vm1, %v3718_v45  ;;  %4869 = vmatprep.subr.mxu1 %v3748_v47  ;;  %v3778_v45 = vld [vmem:[%s6852_s2 + $0x368] sm:$0xff] }
 0x73a   : > { %4870 = vmatpush3.msra.mxu1 %v3748_v47  ;;  %4860 = vmatprep.mubr.msk.f32.mxu1 %vm388_vm1, %v3719_v49  ;;  %v3753_v47 = vld [vmem:[%s6853_s3 + $0x160] sm:$0xff] }
 0x73b   : > { %4871 = vmatprep.subr.mxu1 %v3747_v56  ;;  %v3777_v49 = vld [vmem:[%s6852_s2 + $0x360] sm:$0xff] }
 0x73c   : > { %4872 = vmatpush3.msra.mxu1 %v3747_v56  ;;  %v3754_v56 = vld [vmem:[%s6853_s3 + $0x168] sm:$0xff] }
 0x73d   : > { %4861 = vmatmul.mubr.msk.f32.gmra.mxu1 %vm388_vm1, %v3720_v57  ;;  %4873 = vmatprep.subr.mxu1 %v3746_v58  ;;  %v3776_v57 = vld [vmem:[%s6852_s2 + $0x358] sm:$0xff] }
 0x73e   : > { %4874 = vmatpush3.msra.mxu1 %v3746_v58  ;;  %4863 = vmatprep.mubr.msk.f32.mxu1 %vm388_vm1, %v3721_v59  ;;  %v3755_v58 = vld [vmem:[%s6853_s3 + $0x170] sm:$0xff] }
 0x73f   : > { %4875 = vmatprep.subr.mxu1 %v3745_v60  ;;  %v3775_v59 = vld [vmem:[%s6852_s2 + $0x350] sm:$0xff] }
 0x740   : > { %4876 = vmatpush3.msra.mxu1 %v3745_v60  ;;  %v3756_v60 = vld [vmem:[%s6853_s3 + $0x178] sm:$0xff] }
 0x741   : > { %4864 = vmatmul.mubr.msk.f32.gmra.mxu1 %vm388_vm1, %v3722_v61  ;;  %4877 = vmatprep.subr.mxu1 %v3744_v62  ;;  %v3774_v61 = vld [vmem:[%s6852_s2 + $0x348] sm:$0xff] }
 0x742   : > { %4878 = vmatpush3.msra.mxu1 %v3744_v62  ;;  %4866 = vmatprep.mubr.msk.f32.mxu1 %vm388_vm1, %v3723_v0  ;;  %v3773_v62 = vld [vmem:[%s6852_s2 + $0x340] sm:$0xff]  ;;  %v3772_v0 = vld [vmem:[%s6852_s2 + $0x338] sm:$0xff] }
 0x743   : > { %4879 = vmatprep.subr.mxu1 %v3743_v1 }
 0x744   : > { %4880 = vmatpush3.msra.mxu1 %v3743_v1  ;;  %v3771_v1 = vld [vmem:[%s6852_s2 + $0x330] sm:$0xff] }
 0x745   : > { %4867 = vmatmul.mubr.msk.f32.gmra.mxu1 %vm388_vm1, %v3724_v2  ;;  %4881 = vmatprep.subr.mxu1 %v3742_v5  ;;  %v3770_v2 = vld [vmem:[%s6852_s2 + $0x328] sm:$0xff] }
 0x746   : > { %4882 = vmatpush3.msra.mxu1 %v3742_v5  ;;  %4901 = vmatprep.mubr.f32.mxu1 %v5771_v12  ;;  %v3769_v5 = vld [vmem:[%s6852_s2 + $0x320] sm:$0xff] }
 0x747   : > { %4883 = vmatprep.subr.mxu1 %v3741_v7 }
 0x748   : > { %4884 = vmatpush3.msra.mxu1 %v3741_v7  ;;  %v3768_v7 = vld [vmem:[%s6852_s2 + $0x318] sm:$0xff] }
 0x749   : > { %4885 = vmatprep.subr.mxu1 %v3740_v9 }
 0x74a   : > { %4886 = vmatpush3.msra.mxu1 %v3740_v9  ;;  %v3767_v9 = vld [vmem:[%s6852_s2 + $0x310] sm:$0xff] }
 0x74b   : > { %4887 = vmatprep.subr.mxu1 %v3739_v11 }
 0x74c   : > { %4888 = vmatpush3.msra.mxu1 %v3739_v11  ;;  %v3766_v11 = vld [vmem:[%s6852_s2 + $0x308] sm:$0xff] }
 0x74d   : > { %4889 = vmatprep.subr.mxu1 %v3738_v13 }
 0x74e   : > { %4890 = vmatpush3.msra.mxu1 %v3738_v13  ;;  %v3765_v13 = vld [vmem:[%s6852_s2 + $0x300] sm:$0xff] }
 0x74f   : > { %4891 = vmatprep.subr.mxu1 %v3737_v15 }
 0x750   : > { %4892 = vmatpush3.msra.mxu1 %v3737_v15  ;;  %v3781_v15 = vld [vmem:[%s6853_s3 + $0x180] sm:$0xff] }
 0x751   : > { %4893 = vmatprep.subr.mxu1 %v3736_v17 }
 0x752   : > { %4894 = vmatpush3.msra.mxu1 %v3736_v17 }
 0x753   : > { %4895 = vmatprep.subr.mxu1 %v3735_v18 }
 0x754   : > { %4896 = vmatpush3.msra.mxu1 %v3735_v18 }
 0x755   : > { %4897 = vmatprep.subr.mxu1 %v3734_v19 }
 0x756   : > { %4898 = vmatpush3.msra.mxu1 %v3734_v19 }
 0x757   : > { %4899 = vmatprep.subr.mxu1 %v3733_v20 }
 0x758   : > { %4900 = vmatpush3.msra.mxu1 %v3733_v20 }
 0x759   : > { %4902 = vmatmul.mubr.f32.vlgmr.msra.gmra.mxu1 %v5773_v10 }
 0x75a   : > { %4904 = vmatprep.mubr.f32.mxu1 %v5783_v4 }
 0x75d   : > { %4905 = vmatmul.mubr.f32.gmra.mxu1 %v5790_v3 }
 0x75e   : > { %4907 = vmatprep.mubr.f32.mxu1 %v5793_v31 }
 0x761   : > { %4908 = vmatmul.mubr.f32.gmra.mxu1 %v5804_v35 }
 0x762   : > { %4910 = vmatprep.mubr.f32.mxu1 %v5811_v38 }
 0x765   : > { %4911 = vmatmul.mubr.f32.gmra.mxu1 %v5818_v40 }
 0x766   : > { %5001 = vmatprep.mubr.msk.f32.mxu1 %vm388_vm1, %v3781_v15 }
 0x7f9   : > { %v4859_v22 = vpop.f32.mrf.mxu1 }
 0x7fa   : > { %v6238_v16 = vadd.f32 %v4859_v22, %v6126_v25 }
 0x7fb   : > { %v2035_v14 = vpop.f32.mrf.mxu1 }
 0x7fc   : > { %v6241_v6 = vadd.f32 %v2035_v14, %v6129_v27 }
 0x7fd   : > { %v4862_v8 = vpop.f32.mrf.mxu1 }
 0x7fe   : > { %v6244_v23 = vadd.f32 %v4862_v8, %v6132_v29 }
 0x7ff   : > { %v2045_v26 = vpop.f32.mrf.mxu1 }
 0x800   : > { %v6247_v28 = vadd.f32 %v2045_v26, %v6135_v34 }
 0x801   : > { %v4865_v32 = vpop.f32.mrf.mxu1 }
 0x802   : > { %v6250_v37 = vadd.f32 %v4865_v32, %v6138_v41 }
 0x803   : > { %v2055_v44 = vpop.f32.mrf.mxu1 }
 0x804   : > { %v6253_v25 = vadd.f32 %v2055_v44, %v6141_v30  ;;  %v3750_v30 = vld [vmem:[%s6853_s3 + $0x148] sm:$0xff] }
 0x805   : > { %v4868_v46 = vpop.f32.mrf.mxu1 }
 0x806   : > { %v6256_v27 = vadd.f32 %v4868_v46, %v6144_v33  ;;  %v3780_v33 = vld [vmem:[%s6852_s2 + $0x378] sm:$0xff] }
 0x807   : > { %v2065_v48 = vpop.f32.mrf.mxu1 }
 0x808   : > { %v6259_v29 = vadd.f32 %v2065_v48, %v6147_v36  ;;  %v3751_v36 = vld [vmem:[%s6853_s3 + $0x150] sm:$0xff] }
 0x819   : > { %v4903_v50 = vpop.f32.mrf.mxu1 }
 0x81b   : > { %v2165_v51 = vpop.f32.mrf.mxu1 }
 0x81d   : > { %v4906_v34 = vpop.f32.mrf.mxu1 }
 0x81f   : > { %v2175_v39 = vpop.f32.mrf.mxu1 }
 0x821   : > { %v4909_v52 = vpop.f32.mrf.mxu1 }
 0x823   : > { %v2185_v53 = vpop.f32.mrf.mxu1 }
 0x825   : > { %v4912_v41 = vpop.f32.mrf.mxu1 }
 0x826   : > { %4913 = vmatprep.subr.mxu0 %v4912_v41 }
 0x827   : > { %v2195_v54 = vpop.f32.mrf.mxu1  ;;  %4914 = vmatpush3.msra.mxu0 %v4912_v41  ;;  %v3811_v41 = vld [vmem:[%s6852_s2 + $0x3f0] sm:$0xff] }
 0x828   : > { %4915 = vmatprep.subr.mxu0 %v2195_v54 }
 0x829   : > { %4916 = vmatpush3.msra.mxu0 %v2195_v54  ;;  %v3784_v54 = vld [vmem:[%s6853_s3 + $0x198] sm:$0xff] }
 0x82a   : > { %4917 = vmatprep.subr.mxu0 %v4909_v52 }
 0x82b   : > { %4918 = vmatpush3.msra.mxu0 %v4909_v52 }
 0x82c   : > { %4919 = vmatprep.subr.mxu0 %v2185_v53 }
 0x82d   : > { %4920 = vmatpush3.msra.mxu0 %v2185_v53 }
 0x82e   : > { %4921 = vmatprep.subr.mxu0 %v4906_v34 }
 0x82f   : > { %4922 = vmatpush3.msra.mxu0 %v4906_v34 }
 0x830   : > { %4923 = vmatprep.subr.mxu0 %v2175_v39 }
 0x831   : > { %4924 = vmatpush3.msra.mxu0 %v2175_v39 }
 0x832   : > { %4925 = vmatprep.subr.mxu0 %v4903_v50 }
 0x833   : > { %4926 = vmatpush3.msra.mxu0 %v4903_v50 }
 0x834   : > { %4927 = vmatprep.subr.mxu0 %v2165_v51 }
 0x835   : > { %4928 = vmatpush3.msra.mxu0 %v2165_v51 }
 0x836   : > { %4930 = vmatmul.mubr.msk.f32.vlgmr.msra.gmra.mxu0 %vm388_vm1, %v3750_v30  ;;  %4941 = vmatprep.subr.mxu0 %v3780_v33  ;;  %v3810_v30 = vld [vmem:[%s6852_s2 + $0x3e8] sm:$0xff] }
 0x837   : > { %4942 = vmatpush3.msra.mxu0 %v3780_v33  ;;  %4932 = vmatprep.mubr.msk.f32.mxu0 %vm388_vm1, %v3751_v36  ;;  %v3785_v33 = vld [vmem:[%s6853_s3 + $0x1a0] sm:$0xff] }
 0x838   : > { %4943 = vmatprep.subr.mxu0 %v3779_v42  ;;  %v3809_v36 = vld [vmem:[%s6852_s2 + $0x3e0] sm:$0xff] }
 0x839   : > { %4944 = vmatpush3.msra.mxu0 %v3779_v42  ;;  %v3786_v42 = vld [vmem:[%s6853_s3 + $0x1a8] sm:$0xff] }
 0x83a   : > { %4933 = vmatmul.mubr.msk.f32.gmra.mxu0 %vm388_vm1, %v3752_v55  ;;  %4945 = vmatprep.subr.mxu0 %v3778_v45  ;;  %v3808_v55 = vld [vmem:[%s6852_s2 + $0x3d8] sm:$0xff] }
 0x83b   : > { %4946 = vmatpush3.msra.mxu0 %v3778_v45  ;;  %4935 = vmatprep.mubr.msk.f32.mxu0 %vm388_vm1, %v3753_v47  ;;  %v3787_v45 = vld [vmem:[%s6853_s3 + $0x1b0] sm:$0xff] }
 0x83c   : > { %4947 = vmatprep.subr.mxu0 %v3777_v49  ;;  %v3807_v47 = vld [vmem:[%s6852_s2 + $0x3d0] sm:$0xff] }
 0x83d   : > { %4948 = vmatpush3.msra.mxu0 %v3777_v49  ;;  %v3788_v49 = vld [vmem:[%s6853_s3 + $0x1b8] sm:$0xff] }
 0x83e   : > { %4936 = vmatmul.mubr.msk.f32.gmra.mxu0 %vm388_vm1, %v3754_v56  ;;  %4949 = vmatprep.subr.mxu0 %v3776_v57  ;;  %v3806_v56 = vld [vmem:[%s6852_s2 + $0x3c8] sm:$0xff] }
 0x83f   : > { %4950 = vmatpush3.msra.mxu0 %v3776_v57  ;;  %4938 = vmatprep.mubr.msk.f32.mxu0 %vm388_vm1, %v3755_v58  ;;  %v3805_v57 = vld [vmem:[%s6852_s2 + $0x3c0] sm:$0xff]  ;;  %v3804_v58 = vld [vmem:[%s6852_s2 + $0x3b8] sm:$0xff] }
 0x840   : > { %4951 = vmatprep.subr.mxu0 %v3775_v59 }
 0x841   : > { %4952 = vmatpush3.msra.mxu0 %v3775_v59  ;;  %v3803_v59 = vld [vmem:[%s6852_s2 + $0x3b0] sm:$0xff] }
 0x842   : > { %4939 = vmatmul.mubr.msk.f32.gmra.mxu0 %vm388_vm1, %v3756_v60  ;;  %4953 = vmatprep.subr.mxu0 %v3774_v61  ;;  %v3802_v60 = vld [vmem:[%s6852_s2 + $0x3a8] sm:$0xff] }
 0x843   : > { %4954 = vmatpush3.msra.mxu0 %v3774_v61  ;;  %4973 = vmatprep.mubr.f32.mxu0 %v5771_v12  ;;  %v3801_v61 = vld [vmem:[%s6852_s2 + $0x3a0] sm:$0xff] }
 0x844   : > { %4955 = vmatprep.subr.mxu0 %v3773_v62 }
 0x845   : > { %4956 = vmatpush3.msra.mxu0 %v3773_v62  ;;  %v3800_v62 = vld [vmem:[%s6852_s2 + $0x398] sm:$0xff] }
 0x846   : > { %4957 = vmatprep.subr.mxu0 %v3772_v0 }
 0x847   : > { %4958 = vmatpush3.msra.mxu0 %v3772_v0  ;;  %v3799_v0 = vld [vmem:[%s6852_s2 + $0x390] sm:$0xff] }
 0x848   : > { %4959 = vmatprep.subr.mxu0 %v3771_v1 }
 0x849   : > { %4960 = vmatpush3.msra.mxu0 %v3771_v1  ;;  %v3798_v1 = vld [vmem:[%s6852_s2 + $0x388] sm:$0xff] }
 0x84a   : > { %4961 = vmatprep.subr.mxu0 %v3770_v2 }
 0x84b   : > { %4962 = vmatpush3.msra.mxu0 %v3770_v2  ;;  %v3797_v2 = vld [vmem:[%s6852_s2 + $0x380] sm:$0xff] }
 0x84c   : > { %4963 = vmatprep.subr.mxu0 %v3769_v5 }
 0x84d   : > { %4964 = vmatpush3.msra.mxu0 %v3769_v5  ;;  %v3813_v5 = vld [vmem:[%s6853_s3 + $0x1c0] sm:$0xff] }
 0x84e   : > { %4965 = vmatprep.subr.mxu0 %v3768_v7 }
 0x84f   : > { %4966 = vmatpush3.msra.mxu0 %v3768_v7 }
 0x850   : > { %4967 = vmatprep.subr.mxu0 %v3767_v9 }
 0x851   : > { %4968 = vmatpush3.msra.mxu0 %v3767_v9 }
 0x852   : > { %4969 = vmatprep.subr.mxu0 %v3766_v11 }
 0x853   : > { %4970 = vmatpush3.msra.mxu0 %v3766_v11 }
 0x854   : > { %4971 = vmatprep.subr.mxu0 %v3765_v13 }
 0x855   : > { %4972 = vmatpush3.msra.mxu0 %v3765_v13 }
 0x856   : > { %4974 = vmatmul.mubr.f32.vlgmr.msra.gmra.mxu0 %v5773_v10 }
 0x857   : > { %4976 = vmatprep.mubr.f32.mxu0 %v5783_v4 }
 0x85a   : > { %4977 = vmatmul.mubr.f32.gmra.mxu0 %v5790_v3 }
 0x85b   : > { %4979 = vmatprep.mubr.f32.mxu0 %v5793_v31 }
 0x85e   : > { %4980 = vmatmul.mubr.f32.gmra.mxu0 %v5804_v35 }
 0x85f   : > { %4982 = vmatprep.mubr.f32.mxu0 %v5811_v38 }
 0x862   : > { %4983 = vmatmul.mubr.f32.gmra.mxu0 %v5818_v40 }
 0x863   : > { %5073 = vmatprep.mubr.msk.f32.mxu0 %vm388_vm1, %v3813_v5  ;;  %v6666_v5 = vld [vmem:[%s6855_s5 + $0x10] sm:$0xff] }
 0x8f6   : > { %v4931_v17 = vpop.f32.mrf.mxu0 }
 0x8f7   : > { %v6350_v18 = vadd.f32 %v4931_v17, %v6238_v16 }
 0x8f8   : > { %v2303_v19 = vpop.f32.mrf.mxu0 }
 0x8f9   : > { %v6353_v20 = vadd.f32 %v2303_v19, %v6241_v6 }
 0x8fa   : > { %v4934_v21 = vpop.f32.mrf.mxu0 }
 0x8fb   : > { %v6356_v22 = vadd.f32 %v4934_v21, %v6244_v23 }
 0x8fc   : > { %v2313_v14 = vpop.f32.mrf.mxu0 }
 0x8fd   : > { %v6359_v8 = vadd.f32 %v2313_v14, %v6247_v28 }
 0x8fe   : > { %v4937_v26 = vpop.f32.mrf.mxu0 }
 0x8ff   : > { %v6362_v32 = vadd.f32 %v4937_v26, %v6250_v37 }
 0x900   : > { %v2323_v44 = vpop.f32.mrf.mxu0 }
 0x901   : > { %v6365_v16 = vadd.f32 %v2323_v44, %v6253_v25  ;;  %v3782_v25 = vld [vmem:[%s6853_s3 + $0x188] sm:$0xff] }
 0x902   : > { %v4940_v46 = vpop.f32.mrf.mxu0 }
 0x903   : > { %v6368_v6 = vadd.f32 %v4940_v46, %v6256_v27  ;;  %v3812_v27 = vld [vmem:[%s6852_s2 + $0x3f8] sm:$0xff] }
 0x904   : > { %v2333_v48 = vpop.f32.mrf.mxu0 }
 0x905   : > { %v6371_v23 = vadd.f32 %v2333_v48, %v6259_v29  ;;  %v3783_v29 = vld [vmem:[%s6853_s3 + $0x190] sm:$0xff] }
 0x916   : > { %v4975_v50 = vpop.f32.mrf.mxu0 }
 0x918   : > { %v2433_v51 = vpop.f32.mrf.mxu0 }
 0x91a   : > { %v4978_v28 = vpop.f32.mrf.mxu0 }
 0x91c   : > { %v2443_v34 = vpop.f32.mrf.mxu0 }
 0x91e   : > { %v4981_v39 = vpop.f32.mrf.mxu0 }
 0x920   : > { %v2453_v52 = vpop.f32.mrf.mxu0 }
 0x922   : > { %v4984_v37 = vpop.f32.mrf.mxu0 }
 0x923   : > { %4985 = vmatprep.subr.mxu1 %v4984_v37 }
 0x924   : > { %v2463_v53 = vpop.f32.mrf.mxu0  ;;  %4986 = vmatpush3.msra.mxu1 %v4984_v37  ;;  %v3843_v37 = vld [vmem:[%s6852_s2 + $0x470] sm:$0xff] }
 0x925   : > { %4987 = vmatprep.subr.mxu1 %v2463_v53 }
 0x926   : > { %4988 = vmatpush3.msra.mxu1 %v2463_v53  ;;  %v3816_v53 = vld [vmem:[%s6853_s3 + $0x1d8] sm:$0xff] }
 0x927   : > { %4989 = vmatprep.subr.mxu1 %v4981_v39 }
 0x928   : > { %4990 = vmatpush3.msra.mxu1 %v4981_v39 }
 0x929   : > { %4991 = vmatprep.subr.mxu1 %v2453_v52 }
 0x92a   : > { %4992 = vmatpush3.msra.mxu1 %v2453_v52 }
 0x92b   : > { %4993 = vmatprep.subr.mxu1 %v4978_v28 }
 0x92c   : > { %4994 = vmatpush3.msra.mxu1 %v4978_v28 }
 0x92d   : > { %4995 = vmatprep.subr.mxu1 %v2443_v34 }
 0x92e   : > { %4996 = vmatpush3.msra.mxu1 %v2443_v34 }
 0x92f   : > { %4997 = vmatprep.subr.mxu1 %v4975_v50 }
 0x930   : > { %4998 = vmatpush3.msra.mxu1 %v4975_v50 }
 0x931   : > { %4999 = vmatprep.subr.mxu1 %v2433_v51 }
 0x932   : > { %5000 = vmatpush3.msra.mxu1 %v2433_v51 }
 0x933   : > { %5002 = vmatmul.mubr.msk.f32.vlgmr.msra.gmra.mxu1 %vm388_vm1, %v3782_v25  ;;  %5013 = vmatprep.subr.mxu1 %v3812_v27  ;;  %v3842_v25 = vld [vmem:[%s6852_s2 + $0x468] sm:$0xff] }
 0x934   : > { %5014 = vmatpush3.msra.mxu1 %v3812_v27  ;;  %5004 = vmatprep.mubr.msk.f32.mxu1 %vm388_vm1, %v3783_v29  ;;  %v3817_v27 = vld [vmem:[%s6853_s3 + $0x1e0] sm:$0xff] }
 0x935   : > { %5015 = vmatprep.subr.mxu1 %v3811_v41  ;;  %v3841_v29 = vld [vmem:[%s6852_s2 + $0x460] sm:$0xff] }
 0x936   : > { %5016 = vmatpush3.msra.mxu1 %v3811_v41  ;;  %v3818_v41 = vld [vmem:[%s6853_s3 + $0x1e8] sm:$0xff] }
 0x937   : > { %5005 = vmatmul.mubr.msk.f32.gmra.mxu1 %vm388_vm1, %v3784_v54  ;;  %5017 = vmatprep.subr.mxu1 %v3810_v30  ;;  %v3840_v54 = vld [vmem:[%s6852_s2 + $0x458] sm:$0xff] }
 0x938   : > { %5018 = vmatpush3.msra.mxu1 %v3810_v30  ;;  %5007 = vmatprep.mubr.msk.f32.mxu1 %vm388_vm1, %v3785_v33  ;;  %v3819_v30 = vld [vmem:[%s6853_s3 + $0x1f0] sm:$0xff] }
 0x939   : > { %5019 = vmatprep.subr.mxu1 %v3809_v36  ;;  %v3839_v33 = vld [vmem:[%s6852_s2 + $0x450] sm:$0xff] }
 0x93a   : > { %5020 = vmatpush3.msra.mxu1 %v3809_v36  ;;  %v3820_v36 = vld [vmem:[%s6853_s3 + $0x1f8] sm:$0xff] }
 0x93b   : > { %5008 = vmatmul.mubr.msk.f32.gmra.mxu1 %vm388_vm1, %v3786_v42  ;;  %5021 = vmatprep.subr.mxu1 %v3808_v55  ;;  %v3838_v42 = vld [vmem:[%s6852_s2 + $0x448] sm:$0xff] }
 0x93c   : > { %5022 = vmatpush3.msra.mxu1 %v3808_v55  ;;  %5010 = vmatprep.mubr.msk.f32.mxu1 %vm388_vm1, %v3787_v45  ;;  %v3837_v55 = vld [vmem:[%s6852_s2 + $0x440] sm:$0xff]  ;;  %v3836_v45 = vld [vmem:[%s6852_s2 + $0x438] sm:$0xff] }
 0x93d   : > { %5023 = vmatprep.subr.mxu1 %v3807_v47 }
 0x93e   : > { %5024 = vmatpush3.msra.mxu1 %v3807_v47  ;;  %v3835_v47 = vld [vmem:[%s6852_s2 + $0x430] sm:$0xff] }
 0x93f   : > { %5011 = vmatmul.mubr.msk.f32.gmra.mxu1 %vm388_vm1, %v3788_v49  ;;  %5025 = vmatprep.subr.mxu1 %v3806_v56  ;;  %v3834_v49 = vld [vmem:[%s6852_s2 + $0x428] sm:$0xff] }
 0x940   : > { %5026 = vmatpush3.msra.mxu1 %v3806_v56  ;;  %5045 = vmatprep.mubr.f32.mxu1 %v5771_v12  ;;  %v3832_v56 = vld [vmem:[%s6852_s2 + $0x418] sm:$0xff] }
 0x941   : > { %5027 = vmatprep.subr.mxu1 %v3805_v57 }
 0x942   : > { %5028 = vmatpush3.msra.mxu1 %v3805_v57  ;;  %v3831_v57 = vld [vmem:[%s6852_s2 + $0x410] sm:$0xff] }
 0x943   : > { %5029 = vmatprep.subr.mxu1 %v3804_v58 }
 0x944   : > { %5030 = vmatpush3.msra.mxu1 %v3804_v58  ;;  %v3830_v58 = vld [vmem:[%s6852_s2 + $0x408] sm:$0xff] }
 0x945   : > { %5031 = vmatprep.subr.mxu1 %v3803_v59 }
 0x946   : > { %5032 = vmatpush3.msra.mxu1 %v3803_v59  ;;  %v3829_v59 = vld [vmem:[%s6852_s2 + $0x400] sm:$0xff] }
 0x947   : > { %5033 = vmatprep.subr.mxu1 %v3802_v60 }
 0x948   : > { %5034 = vmatpush3.msra.mxu1 %v3802_v60  ;;  %v6568_v60 = vld [vmem:[%s6855_s5 + $0x78] sm:$0xff] }
 0x949   : > { %5035 = vmatprep.subr.mxu1 %v3801_v61 }
 0x94a   : > { %5036 = vmatpush3.msra.mxu1 %v3801_v61  ;;  %v6575_v61 = vld [vmem:[%s6855_s5 + $0x70] sm:$0xff] }
 0x94b   : > { %5037 = vmatprep.subr.mxu1 %v3800_v62 }
 0x94c   : > { %5038 = vmatpush3.msra.mxu1 %v3800_v62  ;;  %v6638_v62 = vld [vmem:[%s6855_s5 + $0x30] sm:$0xff] }
 0x94d   : > { %5039 = vmatprep.subr.mxu1 %v3799_v0 }
 0x94e   : > { %5040 = vmatpush3.msra.mxu1 %v3799_v0  ;;  %v6645_v0 = vld [vmem:[%s6855_s5 + $0x28] sm:$0xff] }
 0x94f   : > { %5041 = vmatprep.subr.mxu1 %v3798_v1 }
 0x950   : > { %5042 = vmatpush3.msra.mxu1 %v3798_v1  ;;  %v6652_v1 = vld [vmem:[%s6855_s5 + $0x20] sm:$0xff] }
 0x951   : > { %5043 = vmatprep.subr.mxu1 %v3797_v2 }
 0x952   : > { %5044 = vmatpush3.msra.mxu1 %v3797_v2  ;;  %v6659_v2 = vld [vmem:[%s6855_s5 + $0x18] sm:$0xff] }
 0x953   : > { %5046 = vmatmul.mubr.f32.vlgmr.msra.gmra.mxu1 %v5773_v10 }
 0x954   : > { %5048 = vmatprep.mubr.f32.mxu1 %v5783_v4 }
 0x957   : > { %5049 = vmatmul.mubr.f32.gmra.mxu1 %v5790_v3 }
 0x958   : > { %5051 = vmatprep.mubr.f32.mxu1 %v5793_v31 }
 0x95b   : > { %5052 = vmatmul.mubr.f32.gmra.mxu1 %v5804_v35 }
 0x95c   : > { %5054 = vmatprep.mubr.f32.mxu1 %v5811_v38 }
 0x95f   : > { %5055 = vmatmul.mubr.f32.gmra.mxu1 %v5818_v40 }
 0x9f3   : > { %v5003_v7 = vpop.f32.mrf.mxu1 }
 0x9f4   : > { %v6462_v9 = vadd.f32 %v5003_v7, %v6350_v18  ;;  %v6673_v7 = vld [vmem:[%s6855_s5 + $0x8] sm:$0xff] }
 0x9f5   : > { %v2571_v11 = vpop.f32.mrf.mxu1 }
 0x9f6   : > { %v6465_v13 = vadd.f32 %v2571_v11, %v6353_v20  ;;  %v6680_v11 = vld [vmem:[%s6855_s5] sm:$0xff] }
 0x9f7   : > { %v5006_v15 = vpop.f32.mrf.mxu1 }
 0x9f8   : > { %v6468_v17 = vadd.f32 %v5006_v15, %v6356_v22  ;;  %v3845_v15 = vld [vmem:[%s6853_s3 + $0x200] sm:$0xff] }
 0x9f9   : > { %v2581_v19 = vpop.f32.mrf.mxu1  ;;  %5145 = vmatprep.mubr.msk.f32.mxu1 %vm388_vm1, %v3845_v15 }
 0x9fa   : > { %v6471_v21 = vadd.f32 %v2581_v19, %v6359_v8 }
 0x9fb   : > { %v5009_v14 = vpop.f32.mrf.mxu1 }
 0x9fc   : > { %v6474_v26 = vadd.f32 %v5009_v14, %v6362_v32 }
 0x9fd   : > { %v2591_v44 = vpop.f32.mrf.mxu1 }
 0x9fe   : > { %v6477_v18 = vadd.f32 %v2591_v44, %v6365_v16  ;;  %v3814_v16 = vld [vmem:[%s6853_s3 + $0x1c8] sm:$0xff] }
 0x9ff   : > { %v5012_v46 = vpop.f32.mrf.mxu1 }
 0xa00   : > { %v6480_v20 = vadd.f32 %v5012_v46, %v6368_v6  ;;  %v3844_v6 = vld [vmem:[%s6852_s2 + $0x478] sm:$0xff] }
 0xa01   : > { %v2601_v48 = vpop.f32.mrf.mxu1 }
 0xa02   : > { %v6483_v22 = vadd.f32 %v2601_v48, %v6371_v23  ;;  %v3815_v23 = vld [vmem:[%s6853_s3 + $0x1d0] sm:$0xff] }
 0xa13   : > { %v5047_v50 = vpop.f32.mrf.mxu1 }
 0xa15   : > { %v2701_v51 = vpop.f32.mrf.mxu1 }
 0xa17   : > { %v5050_v8 = vpop.f32.mrf.mxu1 }
 0xa19   : > { %v2711_v28 = vpop.f32.mrf.mxu1 }
 0xa1b   : > { %v5053_v34 = vpop.f32.mrf.mxu1 }
 0xa1d   : > { %v2721_v39 = vpop.f32.mrf.mxu1 }
 0xa1f   : > { %v5056_v32 = vpop.f32.mrf.mxu1 }
 0xa20   : > { %5057 = vmatprep.subr.mxu0 %v5056_v32 }
 0xa21   : > { %v2731_v52 = vpop.f32.mrf.mxu1  ;;  %5058 = vmatpush3.msra.mxu0 %v5056_v32 }
 0xa22   : > { %5059 = vmatprep.subr.mxu0 %v2731_v52 }
 0xa23   : > { %5060 = vmatpush3.msra.mxu0 %v2731_v52 }
 0xa24   : > { %5061 = vmatprep.subr.mxu0 %v5053_v34 }
 0xa25   : > { %5062 = vmatpush3.msra.mxu0 %v5053_v34 }
 0xa26   : > { %5063 = vmatprep.subr.mxu0 %v2721_v39 }
 0xa27   : > { %5064 = vmatpush3.msra.mxu0 %v2721_v39 }
 0xa28   : > { %5065 = vmatprep.subr.mxu0 %v5050_v8 }
 0xa29   : > { %5066 = vmatpush3.msra.mxu0 %v5050_v8 }
 0xa2a   : > { %5067 = vmatprep.subr.mxu0 %v2711_v28 }
 0xa2b   : > { %5068 = vmatpush3.msra.mxu0 %v2711_v28 }
 0xa2c   : > { %5069 = vmatprep.subr.mxu0 %v5047_v50 }
 0xa2d   : > { %5070 = vmatpush3.msra.mxu0 %v5047_v50 }
 0xa2e   : > { %5071 = vmatprep.subr.mxu0 %v2701_v51 }
 0xa2f   : > { %5072 = vmatpush3.msra.mxu0 %v2701_v51 }
 0xa30   : > { %5074 = vmatmul.mubr.msk.f32.vlgmr.msra.gmra.mxu0 %vm388_vm1, %v3814_v16  ;;  %5085 = vmatprep.subr.mxu0 %v3844_v6 }
 0xa31   : > { %5086 = vmatpush3.msra.mxu0 %v3844_v6  ;;  %5076 = vmatprep.mubr.msk.f32.mxu0 %vm388_vm1, %v3815_v23 }
 0xa32   : > { %5087 = vmatprep.subr.mxu0 %v3843_v37 }
 0xa33   : > { %5088 = vmatpush3.msra.mxu0 %v3843_v37 }
 0xa34   : > { %5077 = vmatmul.mubr.msk.f32.gmra.mxu0 %vm388_vm1, %v3816_v53  ;;  %5089 = vmatprep.subr.mxu0 %v3842_v25 }
 0xa35   : > { %5090 = vmatpush3.msra.mxu0 %v3842_v25  ;;  %5079 = vmatprep.mubr.msk.f32.mxu0 %vm388_vm1, %v3817_v27 }
 0xa36   : > { %5091 = vmatprep.subr.mxu0 %v3841_v29 }
 0xa37   : > { %5092 = vmatpush3.msra.mxu0 %v3841_v29  ;;  %v3850_v29 = vld [vmem:[%s6853_s3 + $0x228] sm:$0xff] }
 0xa38   : > { %5080 = vmatmul.mubr.msk.f32.gmra.mxu0 %vm388_vm1, %v3818_v41  ;;  %5093 = vmatprep.subr.mxu0 %v3840_v54  ;;  %v3851_v41 = vld [vmem:[%s6853_s3 + $0x230] sm:$0xff] }
 0xa39   : > { %5094 = vmatpush3.msra.mxu0 %v3840_v54  ;;  %5082 = vmatprep.mubr.msk.f32.mxu0 %vm388_vm1, %v3819_v30  ;;  %v3852_v54 = vld [vmem:[%s6853_s3 + $0x238] sm:$0xff] }
 0xa3a   : > { %5095 = vmatprep.subr.mxu0 %v3839_v33 }
 0xa3b   : > { %5096 = vmatpush3.msra.mxu0 %v3839_v33 }
 0xa3c   : > { %5083 = vmatmul.mubr.msk.f32.gmra.mxu0 %vm388_vm1, %v3820_v36  ;;  %5097 = vmatprep.subr.mxu0 %v3838_v42 }
 0xa3d   : > { %5098 = vmatpush3.msra.mxu0 %v3838_v42  ;;  %5117 = vmatprep.mubr.f32.mxu0 %v5771_v12  ;;  %v3833_v12 = vld [vmem:[%s6852_s2 + $0x420] sm:$0xff] }
 0xa3e   : > { %5099 = vmatprep.subr.mxu0 %v3837_v55 }
 0xa3f   : > { %5100 = vmatpush3.msra.mxu0 %v3837_v55 }
 0xa40   : > { %5101 = vmatprep.subr.mxu0 %v3836_v45 }
 0xa41   : > { %5102 = vmatpush3.msra.mxu0 %v3836_v45 }
 0xa42   : > { %5103 = vmatprep.subr.mxu0 %v3835_v47 }
 0xa43   : > { %5104 = vmatpush3.msra.mxu0 %v3835_v47 }
 0xa44   : > { %5105 = vmatprep.subr.mxu0 %v3834_v49 }
 0xa45   : > { %5106 = vmatpush3.msra.mxu0 %v3834_v49 }
 0xa46   : > { %5107 = vmatprep.subr.mxu0 %v3833_v12 }
 0xa47   : > { %5108 = vmatpush3.msra.mxu0 %v3833_v12  ;;  %v3861_v12 = vld [vmem:[%s6854_s4 + $0x3] ss:$0 sm:$0xff] }
 0xa48   : > { %5109 = vmatprep.subr.mxu0 %v3832_v56 }
 0xa49   : > { %5110 = vmatpush3.msra.mxu0 %v3832_v56 }
 0xa4a   : > { %5111 = vmatprep.subr.mxu0 %v3831_v57 }
 0xa4b   : > { %5112 = vmatpush3.msra.mxu0 %v3831_v57 }
 0xa4c   : > { %5113 = vmatprep.subr.mxu0 %v3830_v58 }
 0xa4d   : > { %5114 = vmatpush3.msra.mxu0 %v3830_v58 }
 0xa4e   : > { %5115 = vmatprep.subr.mxu0 %v3829_v59 }
 0xa4f   : > { %5116 = vmatpush3.msra.mxu0 %v3829_v59 }
 0xa50   : > { %5118 = vmatmul.mubr.f32.vlgmr.msra.gmra.mxu0 %v5773_v10  ;;  %5176 = vmatprep.subr.mxu0 %v5304_v24  ;;  %v6584_v10 = vld [vmem:[%s6855_s5 + $0x68] sm:$0xff] }
 0xa51   : > { %5120 = vmatprep.mubr.f32.mxu0 %v5783_v4  ;;  %5177 = vmatpush3.msra.mxu0 %v6568_v60  ;;  %v6591_v4 = vld [vmem:[%s6855_s5 + $0x60] sm:$0xff] }
 0xa52   : > { %5178 = vmatprep.subr.mxu0 %v5304_v24 }
 0xa53   : > { %5179 = vmatpush3.msra.mxu0 %v6575_v61 }
 0xa54   : > { %5121 = vmatmul.mubr.f32.gmra.mxu0 %v5790_v3  ;;  %5180 = vmatprep.subr.mxu0 %v5304_v24  ;;  %v6600_v3 = vld [vmem:[%s6855_s5 + $0x58] sm:$0xff] }
 0xa55   : > { %5123 = vmatprep.mubr.f32.mxu0 %v5793_v31  ;;  %5181 = vmatpush3.msra.mxu0 %v6584_v10  ;;  %v6607_v31 = vld [vmem:[%s6855_s5 + $0x50] sm:$0xff] }
 0xa56   : > { %5182 = vmatprep.subr.mxu0 %v5304_v24 }
 0xa57   : > { %5183 = vmatpush3.msra.mxu0 %v6591_v4 }
 0xa58   : > { %5124 = vmatmul.mubr.f32.gmra.mxu0 %v5804_v35  ;;  %5184 = vmatprep.subr.mxu0 %v5304_v24  ;;  %v6615_v35 = vld [vmem:[%s6855_s5 + $0x48] sm:$0xff] }
 0xa59   : > { %5126 = vmatprep.mubr.f32.mxu0 %v5811_v38  ;;  %5185 = vmatpush3.msra.mxu0 %v6600_v3  ;;  %v6624_v38 = vld [vmem:[%s6855_s5 + $0x40] sm:$0xff] }
 0xa5a   : > { %5186 = vmatprep.subr.mxu0 %v5304_v24 }
 0xa5b   : > { %5187 = vmatpush3.msra.mxu0 %v6607_v31 }
 0xa5c   : > { %5127 = vmatmul.mubr.f32.gmra.mxu0 %v5818_v40  ;;  %5188 = vmatprep.subr.mxu0 %v5304_v24  ;;  %v6631_v40 = vld [vmem:[%s6855_s5 + $0x38] sm:$0xff] }
 0xa5d   : > { %5189 = vmatpush3.msra.mxu0 %v6615_v35  ;;  %5208 = vmatprep.mubr.msk.f32.mxu0 %vm5305_vm0, %v5304_v24 }
 0xa5e   : > { %5190 = vmatprep.subr.mxu0 %v5304_v24 }
 0xa5f   : > { %5191 = vmatpush3.msra.mxu0 %v6624_v38 }
 0xa60   : > { %5192 = vmatprep.subr.mxu0 %v5304_v24 }
 0xa61   : > { %5193 = vmatpush3.msra.mxu0 %v6631_v40 }
 0xa62   : > { %5194 = vmatprep.subr.mxu0 %v5304_v24 }
 0xa63   : > { %5195 = vmatpush3.msra.mxu0 %v6638_v62 }
 0xa64   : > { %5196 = vmatprep.subr.mxu0 %v5304_v24 }
 0xa65   : > { %5197 = vmatpush3.msra.mxu0 %v6645_v0 }
 0xa66   : > { %5198 = vmatprep.subr.mxu0 %v5304_v24 }
 0xa67   : > { %5199 = vmatpush3.msra.mxu0 %v6652_v1 }
 0xa68   : > { %5200 = vmatprep.subr.mxu0 %v5304_v24 }
 0xa69   : > { %5201 = vmatpush3.msra.mxu0 %v6659_v2 }
 0xa6a   : > { %5202 = vmatprep.subr.mxu0 %v5304_v24 }
 0xa6b   : > { %5203 = vmatpush3.msra.mxu0 %v6666_v5 }
 0xa6c   : > { %5204 = vmatprep.subr.mxu0 %v5304_v24 }
 0xa6d   : > { %5205 = vmatpush3.msra.mxu0 %v6673_v7 }
 0xa6e   : > { %5206 = vmatprep.subr.mxu0 %v5304_v24 }
 0xa6f   : > { %5207 = vmatpush3.msra.mxu0 %v6680_v11 }
 0xaf0   : > { %v5075_v19 = vpop.f32.mrf.mxu0 }
 0xaf1   : > { %v6688_v14 = vadd.f32 %v5075_v19, %v6462_v9 }
 0xaf2   : > { %v2839_v44 = vpop.f32.mrf.mxu0 }
 0xaf3   : > { %v6691_v46 = vadd.f32 %v2839_v44, %v6465_v13 }
 0xaf4   : > { %v5078_v48 = vpop.f32.mrf.mxu0 }
 0xaf5   : > { %v6694_v50 = vadd.f32 %v5078_v48, %v6468_v17 }
 0xaf6   : > { %v2849_v51 = vpop.f32.mrf.mxu0 }
 0xaf7   : > { %v6697_v8 = vadd.f32 %v2849_v51, %v6471_v21 }
 0xaf8   : > { %v5081_v28 = vpop.f32.mrf.mxu0 }
 0xaf9   : > { %v2883_v34 = vadd.f32 %v5081_v28, %v6474_v26  ;;  %v3846_v26 = vld [vmem:[%s6853_s3 + $0x208] sm:$0xff] }
 0xafa   : > { %v2859_v39 = vpop.f32.mrf.mxu0 }
 0xafb   : > { %v2882_v32 = vadd.f32 %v2859_v39, %v6477_v18  ;;  %v3847_v18 = vld [vmem:[%s6853_s3 + $0x210] sm:$0xff] }
 0xafc   : > { %v5084_v9 = vpop.f32.mrf.mxu0 }
 0xafd   : > { %v2885_v52 = vadd.f32 %v5084_v9, %v6480_v20  ;;  %v3848_v20 = vld [vmem:[%s6853_s3 + $0x218] sm:$0xff] }
 0xafe   : > { %v2869_v16 = vpop.f32.mrf.mxu0 }
 0xaff   : > { %v2884_v13 = vadd.f32 %v2869_v16, %v6483_v22  ;;  %v3849_v22 = vld [vmem:[%s6853_s3 + $0x220] sm:$0xff] }
 0xb10   : > { %v5119_v6 = vpop.f32.mrf.mxu0 }
 0xb12   : > { %v2969_v23 = vpop.f32.mrf.mxu0 }
 0xb14   : > { %v5122_v17 = vpop.f32.mrf.mxu0 }
 0xb16   : > { %v2979_v37 = vpop.f32.mrf.mxu0 }
 0xb18   : > { %v5125_v53 = vpop.f32.mrf.mxu0 }
 0xb1a   : > { %v2989_v25 = vpop.f32.mrf.mxu0 }
 0xb1c   : > { %v5128_v21 = vpop.f32.mrf.mxu0 }
 0xb1d   : > { %5129 = vmatprep.subr.mxu1 %v5128_v21 }
 0xb1e   : > { %v2999_v27 = vpop.f32.mrf.mxu0  ;;  %5130 = vmatpush3.msra.mxu1 %v5128_v21 }
 0xb1f   : > { %5131 = vmatprep.subr.mxu1 %v2999_v27 }
 0xb20   : > { %5132 = vmatpush3.msra.mxu1 %v2999_v27 }
 0xb21   : > { %5133 = vmatprep.subr.mxu1 %v5125_v53 }
 0xb22   : > { %5134 = vmatpush3.msra.mxu1 %v5125_v53 }
 0xb23   : > { %5135 = vmatprep.subr.mxu1 %v2989_v25 }
 0xb24   : > { %5136 = vmatpush3.msra.mxu1 %v2989_v25 }
 0xb25   : > { %5137 = vmatprep.subr.mxu1 %v5122_v17 }
 0xb26   : > { %5138 = vmatpush3.msra.mxu1 %v5122_v17 }
 0xb27   : > { %5139 = vmatprep.subr.mxu1 %v2979_v37 }
 0xb28   : > { %5140 = vmatpush3.msra.mxu1 %v2979_v37 }
 0xb29   : > { %5141 = vmatprep.subr.mxu1 %v5119_v6 }
 0xb2a   : > { %5142 = vmatpush3.msra.mxu1 %v5119_v6 }
 0xb2b   : > { %5143 = vmatprep.subr.mxu1 %v2969_v23 }
 0xb2c   : > { %5144 = vmatpush3.msra.mxu1 %v2969_v23 }
 0xb2d   : > { %5146 = vmatmul.mubr.msk.f32.vlgmr.msra.gmra.mxu1 %vm388_vm1, %v3846_v26  ;;  %5157 = vmatprep.subr.mxu1 %v5304_v24 }
 0xb2e   : > { %5148 = vmatprep.mubr.msk.f32.mxu1 %vm388_vm1, %v3847_v18 }
 0xb31   : > { %5149 = vmatmul.mubr.msk.f32.gmra.mxu1 %vm388_vm1, %v3848_v20 }
 0xb32   : > { %5151 = vmatprep.mubr.msk.f32.mxu1 %vm388_vm1, %v3849_v22 }
 0xb35   : > { %5152 = vmatmul.mubr.msk.f32.gmra.mxu1 %vm388_vm1, %v3850_v29 }
 0xb36   : > { %5154 = vmatprep.mubr.msk.f32.mxu1 %vm388_vm1, %v3851_v41 }
 0xb39   : > { %5155 = vmatmul.mubr.msk.f32.gmra.mxu1 %vm388_vm1, %v3852_v54 }
 0xb3a   : > { %5173 = vmatprep.mubr.msk.f32.mxu1 %vm5305_vm0, %v5304_v24 }
 0xbed   : > { %v5147_v30 = vpop.f32.mrf.mxu1 }
 0xbef   : > { %v3107_v33 = vpop.f32.mrf.mxu1 }
 0xbf1   : > { %v5150_v36 = vpop.f32.mrf.mxu1 }
 0xbf2   : > { %v3149_v44 = vadd.f32 %v5150_v36, %v6694_v50 }
 0xbf3   : > { %v3117_v42 = vpop.f32.mrf.mxu1 }
 0xbf4   : > { %v3148_v51 = vadd.f32 %v3117_v42, %v6697_v8  ;;  %v3162_v39 = vadd.f32 %v3861_v12, %v3149_v44 }
 0xbf5   : > { %v5153_v55 = vpop.f32.mrf.mxu1 }
 0xbf6   : > { %v3151_v57 = vadd.f32 %v5153_v55, %v2883_v34  ;;  %v3147_v34 = vadd.f32 %v5147_v30, %v6688_v14  ;;  %v3161_v9 = vadd.f32 %v3861_v12, %v3148_v51 }
 0xbf7   : > { %v3127_v45 = vpop.f32.mrf.mxu1 }
 0xbf8   : > { %v3150_v15 = vadd.f32 %v3127_v45, %v2882_v32  ;;  %v3164_v48 = vadd.f32 %v3861_v12, %v3151_v57  ;;  %v3146_v32 = vadd.f32 %v3107_v33, %v6691_v46  ;;  %v3160_v50 = vadd.f32 %v3861_v12, %v3147_v34 }
 0xbf9   : > { %v5156_v47 = vpop.f32.mrf.mxu1 }
 0xbfa   : > { %v3153_v49 = vadd.f32 %v5156_v47, %v2885_v52  ;;  %v3163_v28 = vadd.f32 %v3861_v12, %v3150_v15  ;;  %v3159_v8 = vadd.f32 %v3861_v12, %v3146_v32 }
 0xbfb   : > { %v3137_v56 = vpop.f32.mrf.mxu1 }
 0xbfc   : > { %v3166_v58 = vadd.f32 %v3861_v12, %v3153_v49  ;;  %v3152_v59 = vadd.f32 %v3137_v56, %v2884_v13 }
 0xbfe   : > { %v3165_v19 = vadd.f32 %v3861_v12, %v3152_v59  ;;  %5158 = vmatpush3.msra.mxu1 %v3166_v58 }
 0xbff   : > { %5159 = vmatprep.subr.mxu1 %v5304_v24 }
 0xc00   : > { %5160 = vmatpush3.msra.mxu1 %v3165_v19 }
 0xc01   : > { %5161 = vmatprep.subr.mxu1 %v5304_v24 }
 0xc02   : > { %5162 = vmatpush3.msra.mxu1 %v3164_v48 }
 0xc03   : > { %5163 = vmatprep.subr.mxu1 %v5304_v24 }
 0xc04   : > { %5164 = vmatpush3.msra.mxu1 %v3163_v28 }
 0xc05   : > { %5165 = vmatprep.subr.mxu1 %v5304_v24 }
 0xc06   : > { %5166 = vmatpush3.msra.mxu1 %v3162_v39 }
 0xc07   : > { %5167 = vmatprep.subr.mxu1 %v5304_v24 }
 0xc08   : > { %5168 = vmatpush3.msra.mxu1 %v3161_v9 }
 0xc09   : > { %5169 = vmatprep.subr.mxu1 %v5304_v24 }
 0xc0a   : > { %5170 = vmatpush3.msra.mxu1 %v3160_v50 }
 0xc0b   : > { %5171 = vmatprep.subr.mxu1 %v5304_v24 }
 0xc0c   : > { %5172 = vmatpush3.msra.mxu1 %v3159_v8 }
 0xc0d   : > { %5174 = vmatmul.mubr.msk.f32.vlgmr.msra.gmra.mxu1 %vm388_vm1, %v5306_v43  ;;  %5211 = vmatprep.subr.mxu1 %v5304_v24 }
 0xc0e   : > { %5227 = vmatprep.mubr.msk.f32.mxu1 %vm5305_vm0, %v5304_v24 }
 0xccd   : > { %v3235_v14 = vpop.f32.mrf.mxu1 }
 0xcce   : > { %5209 = vmatmul.mubr.f32.vlgmr.msra.gmra.mxu0 %v3235_v14 }
 0xccf   : > { %v5175_v46 = vpop.f32.mrf.mxu1 }
 0xd8e   : > { %v3305_v52 = vpop.f32.mrf.mxu0 }
 0xd8f   : > { %v3312_v16 = vrot.slane %v3305_v52, %v5572_v63 }
 0xd90   : > { %v5210_v13 = vpop.f32.mrf.mxu0 }
 0xd91   : > { %v6754_v6 = vsub.f32 %v3166_v58, %v3312_v16  ;;  %v6756_v23 = vsub.f32 %v3165_v19, %v3312_v16  ;;  %v6760_v37 = vsub.f32 %v3164_v48, %v3312_v16  ;;  %v6764_v25 = vsub.f32 %v3163_v28, %v3312_v16 }
 0xd92   : > { %v6769_v27 = vsub.f32 %v3162_v39, %v3312_v16  ;;  %v6774_v18 = vsub.f32 %v3161_v9, %v3312_v16  ;;  %v3314_v22 = vsub.f32 %v3160_v50, %v3312_v16  ;;  %v3313_v41 = vsub.f32 %v3159_v8, %v3312_v16 }
 0xd93   : > { %v3328_v17 = vmul.f32 %v6754_v6, %v6754_v6  ;;  %v3327_v53 = vmul.f32 %v6756_v23, %v6756_v23  ;;  %v3326_v21 = vmul.f32 %v6760_v37, %v6760_v37  ;;  %v3325_v26 = vmul.f32 %v6764_v25, %v6764_v25 }
 0xd94   : > { %v3324_v20 = vmul.f32 %v6769_v27, %v6769_v27  ;;  %v3323_v29 = vmul.f32 %v6774_v18, %v6774_v18  ;;  %v3322_v54 = vmul.f32 %v3314_v22, %v3314_v22  ;;  %v3321_v30 = vmul.f32 %v3313_v41, %v3313_v41 }
 0xd95   : > { %5212 = vmatpush3.msra.mxu1 %v3328_v17 }
 0xd96   : > { %5213 = vmatprep.subr.mxu1 %v5304_v24 }
 0xd97   : > { %5214 = vmatpush3.msra.mxu1 %v3327_v53 }
 0xd98   : > { %5215 = vmatprep.subr.mxu1 %v5304_v24 }
 0xd99   : > { %5216 = vmatpush3.msra.mxu1 %v3326_v21 }
 0xd9a   : > { %5217 = vmatprep.subr.mxu1 %v5304_v24 }
 0xd9b   : > { %5218 = vmatpush3.msra.mxu1 %v3325_v26 }
 0xd9c   : > { %5219 = vmatprep.subr.mxu1 %v5304_v24 }
 0xd9d   : > { %5220 = vmatpush3.msra.mxu1 %v3324_v20 }
 0xd9e   : > { %5221 = vmatprep.subr.mxu1 %v5304_v24 }
 0xd9f   : > { %5222 = vmatpush3.msra.mxu1 %v3323_v29 }
 0xda0   : > { %5223 = vmatprep.subr.mxu1 %v5304_v24 }
 0xda1   : > { %5224 = vmatpush3.msra.mxu1 %v3322_v54 }
 0xda2   : > { %5225 = vmatprep.subr.mxu1 %v5304_v24 }
 0xda3   : > { %5226 = vmatpush3.msra.mxu1 %v3321_v30 }
 0xda4   : > { %5228 = vmatmul.mubr.msk.f32.vlgmr.msra.gmra.mxu1 %vm388_vm1, %v5306_v43  ;;  %5230 = vmatprep.subr.mxu1 %v5304_v24 }
 0xda5   : > { %5231 = vmatpush3.msra.mxu1 %v6568_v60  ;;  %5262 = vmatprep.mubr.msk.f32.mxu1 %vm5305_vm0, %v5304_v24 }
 0xda6   : > { %5232 = vmatprep.subr.mxu1 %v5304_v24 }
 0xda7   : > { %5233 = vmatpush3.msra.mxu1 %v6575_v61 }
 0xda8   : > { %5234 = vmatprep.subr.mxu1 %v5304_v24 }
 0xda9   : > { %5235 = vmatpush3.msra.mxu1 %v6584_v10 }
 0xdaa   : > { %5236 = vmatprep.subr.mxu1 %v5304_v24 }
 0xdab   : > { %5237 = vmatpush3.msra.mxu1 %v6591_v4 }
 0xdac   : > { %5238 = vmatprep.subr.mxu1 %v5304_v24 }
 0xdad   : > { %5239 = vmatpush3.msra.mxu1 %v6600_v3 }
 0xdae   : > { %5240 = vmatprep.subr.mxu1 %v5304_v24 }
 0xdaf   : > { %5241 = vmatpush3.msra.mxu1 %v6607_v31  ;;  %v3167_v31 = vld [vmem:[%s6854_s4 + $0x4] sm:$0x1] }
 0xdb0   : > { %5242 = vmatprep.subr.mxu1 %v5304_v24 }
 0xdb1   : > { %5243 = vmatpush3.msra.mxu1 %v6615_v35 }
 0xdb2   : > { %5244 = vmatprep.subr.mxu1 %v5304_v24 }
 0xdb3   : > { %5245 = vmatpush3.msra.mxu1 %v6624_v38 }
 0xdb4   : > { %5246 = vmatprep.subr.mxu1 %v5304_v24 }
 0xdb5   : > { %5247 = vmatpush3.msra.mxu1 %v6631_v40 }
 0xdb6   : > { %5248 = vmatprep.subr.mxu1 %v5304_v24 }
 0xdb7   : > { %5249 = vmatpush3.msra.mxu1 %v6638_v62 }
 0xdb8   : > { %5250 = vmatprep.subr.mxu1 %v5304_v24 }
 0xdb9   : > { %5251 = vmatpush3.msra.mxu1 %v6645_v0 }
 0xdba   : > { %5252 = vmatprep.subr.mxu1 %v5304_v24 }
 0xdbb   : > { %5253 = vmatpush3.msra.mxu1 %v6652_v1 }
 0xdbc   : > { %5254 = vmatprep.subr.mxu1 %v5304_v24 }
 0xdbd   : > { %5255 = vmatpush3.msra.mxu1 %v6659_v2 }
 0xdbe   : > { %5256 = vmatprep.subr.mxu1 %v5304_v24 }
 0xdbf   : > { %5257 = vmatpush3.msra.mxu1 %v6666_v5 }
 0xdc0   : > { %5258 = vmatprep.subr.mxu1 %v5304_v24 }
 0xdc1   : > { %5259 = vmatpush3.msra.mxu1 %v6673_v7 }
 0xdc2   : > { %5260 = vmatprep.subr.mxu1 %v5304_v24  ;;  %v3864_v24 = vld [vmem:[%s6854_s4 + $0x5] ss:$0 sm:$0xff] }
 0xdc3   : > { %5261 = vmatpush3.msra.mxu1 %v6680_v11 }
 0xe64   : > { %v3395_v43 = vpop.f32.mrf.mxu1 }
 0xe65   : > { %5263 = vmatmul.mubr.f32.vlgmr.msra.gmra.mxu1 %v3395_v43 }
 0xe66   : > { %v5229_v60 = vpop.f32.mrf.mxu1 }
 0xf25   : > { %v3465_v61 = vpop.f32.mrf.mxu1 }
 0xf26   : > { %v3469_v10 = vmax.f32 %v3465_v61, 0.0 }
 0xf27   : > { %v5264_v4 = vpop.f32.mrf.mxu1 }
 0xf28   : > { %v3470_v3 = vadd.f32 1e-05, %v3469_v10 }
 0xf2a   : > { %5278 = vrsqrt.f32 %v3470_v3 }
 0xf37   : > { %v5279_v35 = vpop.eup %5278 }
 0xf38   : > { %v3472_v38 = vmul.f32 %v5279_v35, %v3167_v31 }
 0xf3a   : > { %v3476_v40 = vrot.slane %v3472_v38, %v5572_v63 }
 0xf3c   : > { %v3477_v62 = vmul.f32 %v3476_v40, %v3313_v41  ;;  %v3478_v0 = vmul.f32 %v3476_v40, %v3314_v22  ;;  %v3479_v1 = vmul.f32 %v3476_v40, %v6774_v18  ;;  %v3480_v2 = vmul.f32 %v3476_v40, %v6769_v27 }
 0xf3d   : > { %v3481_v5 = vmul.f32 %v3476_v40, %v6764_v25  ;;  %v3482_v7 = vmul.f32 %v3476_v40, %v6760_v37  ;;  %v3483_v11 = vmul.f32 %v3476_v40, %v6756_v23  ;;  %v3484_v33 = vmul.f32 %v3476_v40, %v6754_v6 }
 0xf3e   : > { %v3489_v36 = vadd.f32 %v3864_v24, %v3477_v62  ;;  %v3490_v63 = vadd.f32 %v3864_v24, %v3478_v0  ;;  %v3491_v42 = vadd.f32 %v3864_v24, %v3479_v1  ;;  %v3492_v55 = vadd.f32 %v3864_v24, %v3480_v2 }
 0xf3f   : > { %v3493_v45 = vadd.f32 %v3864_v24, %v3481_v5  ;;  %v3494_v47 = vadd.f32 %v3864_v24, %v3482_v7  ;;  %v3495_v49 = vadd.f32 %v3864_v24, %v3483_v11  ;;  %v3496_v12 = vadd.f32 %v3864_v24, %v3484_v33 }
 0xf40   : > { %vm3497_vm10 = vcmp.ge.f32.partialorder %v3489_v36, 0.0  ;;  %vm3498_vm11 = vcmp.ge.f32.partialorder %v3490_v63, 0.0  ;;  %vm3499_vm12 = vcmp.ge.f32.partialorder %v3491_v42, 0.0  ;;  %vm3500_vm13 = vcmp.ge.f32.partialorder %v3492_v55, 0.0 }
 0xf41   : > { %vm3501_vm14 = vcmp.ge.f32.partialorder %v3493_v45, 0.0  ;;  %vm3502_vm15 = vcmp.ge.f32.partialorder %v3494_v47, 0.0  ;;  %vm3503_vm0 = vcmp.ge.f32.partialorder %v3495_v49, 0.0  ;;  %vm3504_vm1 = vcmp.ge.f32.partialorder %v3496_v12, 0.0 }
 0xf42   : > { %v3505_v56 = vmul.f32 0.01, %v3489_v36  ;;  %v3506_v57 = vmul.f32 0.01, %v3490_v63  ;;  %v3507_v58 = vmul.f32 0.01, %v3491_v42 }
 0xf43   : > { %v3508_v59 = vmul.f32 0.01, %v3492_v55  ;;  %v3509_v15 = vmul.f32 0.01, %v3493_v45  ;;  %v3510_v19 = vmul.f32 0.01, %v3494_v47 }
 0xf44   : > { %v3511_v44 = vmul.f32 0.01, %v3495_v49  ;;  %v3512_v48 = vmul.f32 0.01, %v3496_v12  ;;  %v3513_v51 = vsel %vm3497_vm10, %v3489_v36, %v3505_v56  ;;  %v3514_v28 = vsel %vm3498_vm11, %v3490_v63, %v3506_v57 }
 0xf45   : > { %v3515_v34 = vsel %vm3499_vm12, %v3491_v42, %v3507_v58  ;;  %v3516_v39 = vsel %vm3500_vm13, %v3492_v55, %v3508_v59  ;;  %v3517_v32 = vsel %vm3501_vm14, %v3493_v45, %v3509_v15  ;;  %v3518_v9 = vsel %vm3502_vm15, %v3494_v47, %v3510_v19  ;;  %3521 = vst [vmem:[%s251_s20] sm:$0xff] %v3513_v51 }
 0xf46   : > { %3522 = vst [vmem:[%s251_s20 + $0x8] sm:$0xff] %v3514_v28  ;;  %v3519_v50 = vsel %vm3503_vm0, %v3495_v49, %v3511_v44  ;;  %v3520_v8 = vsel %vm3504_vm1, %v3496_v12, %v3512_v48  ;;  %3523 = vst [vmem:[%s251_s20 + $0x10] sm:$0xff] %v3515_v34 }
 0xf47   : > { %3524 = vst [vmem:[%s251_s20 + $0x18] sm:$0xff] %v3516_v39  ;;  %3525 = vst [vmem:[%s251_s20 + $0x20] sm:$0xff] %v3517_v32 }
 0xf48   : > { %3526 = vst [vmem:[%s251_s20 + $0x28] sm:$0xff] %v3518_v9  ;;  %3527 = vst [vmem:[%s251_s20 + $0x30] sm:$0xff] %v3519_v50 }
 0xf49   : > { %3528 = vst [vmem:[%s251_s20 + $0x38] sm:$0xff] %v3520_v8 }
 0xf4a PF: > { %s16_s21 = sadd.s32 1, %s5302_s21  }
 0xf4b   : > { %p13_p4 = scmp.ge.s32.totalorder %s16_s21, 4  }
 0xf4d   :  { %15 = sbr.rel (!%p13_p4) target bundleno = 1 (0x1), region = 90 }

</bundles_post_ra>
